<compile_context>
chip_gen: v7x
topology: tpu7x:2x2x1
jax: 0.10.0
libtpu: 0.0.40
codegen_flags: <defaults>
</compile_context>

<pallas_src>
import math

import jax
import jax.numpy as jnp
from jax.experimental import pallas as pl
from jax.experimental.pallas import tpu as pltpu

HIDDEN = 128  # fixed by the module architecture


def _softplus(x):
    # numerically stable softplus, matches F.softplus semantics
    return jnp.maximum(x, 0.0) + jnp.log1p(jnp.exp(-jnp.abs(x)))


def _velocity_kernel(yt_ref, y0_ref,               # (B_TILE, S) each
                     g1_ref, g2_ref, g3_ref,       # (B_TILE, H) fused per-layer gates
                     w1_ref, b1_ref,               # (2, H), (1, H)
                     w2_ref, b2_ref,               # (H, H), (1, H)
                     w3_ref, b3_ref,               # (H, H), (1, H)
                     w4_ref, b4_ref,               # (1, H), (1, 1)
                     out_ref):                     # (1, 1, B_TILE*S)
    bt, s = yt_ref.shape
    h_dim = w2_ref.shape[0]
    rows = bt * s

    yt = yt_ref[...]                               # (BT, S)
    y0 = y0_ref[...]                               # (BT, S)

    # ---- layer 1: K=2 "matmul" done on the VPU as broadcast multiply-adds ----
    w1a = w1_ref[0:1, :]                           # (1, H) weight row for y_t
    w1b = w1_ref[1:2, :]                           # (1, H) weight row for y_0_hat
    b1 = b1_ref[...]                               # (1, H)
    h = (yt[:, :, None] * w1a[None, :, :]
         + y0[:, :, None] * w1b[None, :, :]
         + b1[None, :, :])                         # (BT, S, H)
    h = _softplus(h * g1_ref[...][:, None, :])     # fused gate: embed[t]*(1+cov_gamma)

    # ---- layer 2: MXU matmul on flattened (BT*S, H) rows ----
    h2 = h.reshape(rows, h_dim)                    # tile-aligned reshape (S multiple of 8)
    h2 = jnp.dot(h2, w2_ref[...], preferred_element_type=jnp.float32) + b2_ref[...]
    h2 = _softplus(h2.reshape(bt, s, h_dim) * g2_ref[...][:, None, :])

    # ---- layer 3 ----
    h3 = h2.reshape(rows, h_dim)
    h3 = jnp.dot(h3, w3_ref[...], preferred_element_type=jnp.float32) + b3_ref[...]
    h3 = _softplus(h3.reshape(bt, s, h_dim) * g3_ref[...][:, None, :])
    h3 = h3.reshape(rows, h_dim)

    # ---- final H -> 1 projection as (1,H) . (rows,H)^T -> lane-dense (1, rows) ----
    out_row = jax.lax.dot_general(
        w4_ref[...], h3,
        dimension_numbers=(((1,), (1,)), ((), ())),
        preferred_element_type=jnp.float32)        # (1, rows)
    out_ref[0] = (out_row + b4_ref[...]).astype(out_ref.dtype)


def conditional_velocity_forward(y_t, y_0_hat, t, cov_embedding, params):
    """Pallas implementation of ConditionalVelocityModel.forward (cat_x, cat_y_pred)."""
    B, S, _ = y_t.shape
    H = HIDDEN

    # ---- wrapper-side prep (tiny XLA ops): embedding gather + covariate gates ----
    def fused_gate(e_table, cw, cb):
        gamma = jnp.take(e_table, t, axis=0)                  # (B, H)
        cov_gamma = cov_embedding @ cw + cb                   # (B, H)
        return gamma * (1.0 + cov_gamma)

    g1 = fused_gate(params["e1"], params["cw1"], params["cb1"])
    g2 = fused_gate(params["e2"], params["cw2"], params["cb2"])
    g3 = fused_gate(params["e3"], params["cw3"], params["cb3"])

    yt2 = y_t[..., 0]                                         # (B, S) lane axis = S
    y02 = y_0_hat[..., 0]                                     # (B, S)

    # ---- batch tiling: B_TILE*S flattened rows per grid step (multiple of 128) ----
    lane = 128
    B_TILE = max(8, lane // math.gcd(S, lane))                # B_TILE*S % 128 == 0
    while B >= B_TILE * 2 and B_TILE * 2 * S <= 512:          # grow tile for big batches
        B_TILE *= 2
    n_tiles = pl.cdiv(B, B_TILE)
    B_pad = n_tiles * B_TILE
    if B_pad != B:
        pad = ((0, B_pad - B), (0, 0))
        yt2 = jnp.pad(yt2, pad)
        y02 = jnp.pad(y02, pad)
        g1 = jnp.pad(g1, pad)
        g2 = jnp.pad(g2, pad)
        g3 = jnp.pad(g3, pad)

    rows = B_TILE * S
    w4_row = params["w4"].T                                   # (1, H)
    b4 = params["b4"].reshape(1, 1)

    batch_blk = lambda i: (i, 0)
    whole = lambda i: (0, 0)

    out = pl.pallas_call(
        _velocity_kernel,
        out_shape=jax.ShapeDtypeStruct((n_tiles, 1, rows), jnp.float32),
        grid=(n_tiles,),
        in_specs=[
            pl.BlockSpec((B_TILE, S), batch_blk),   # y_t
            pl.BlockSpec((B_TILE, S), batch_blk),   # y_0_hat
            pl.BlockSpec((B_TILE, H), batch_blk),   # gate 1
            pl.BlockSpec((B_TILE, H), batch_blk),   # gate 2
            pl.BlockSpec((B_TILE, H), batch_blk),   # gate 3
            pl.BlockSpec((2, H), whole),            # w1
            pl.BlockSpec((1, H), whole),            # b1
            pl.BlockSpec((H, H), whole),            # w2
            pl.BlockSpec((1, H), whole),            # b2
            pl.BlockSpec((H, H), whole),            # w3
            pl.BlockSpec((1, H), whole),            # b3
            pl.BlockSpec((1, H), whole),            # w4 (row form)
            pl.BlockSpec((1, 1), whole),            # b4
        ],
        out_specs=pl.BlockSpec((1, 1, rows), lambda i: (i, 0, 0)),
        compiler_params=pltpu.CompilerParams(
            dimension_semantics=("parallel",)),     # disjoint outputs -> 2 TCs on v7x
    )(yt2, y02, g1, g2, g3,
      params["w1"], params["b1"],
      params["w2"], params["b2"],
      params["w3"], params["b3"],
      w4_row, b4)

    # rows within a tile are (b_local, s) row-major -> global order is (b, s)
    return out.reshape(B_pad, S, 1)[:B]


def reference_forward(y_t, y_0_hat, t, cov_embedding, params):
    """Plain-JAX reference mirroring the PyTorch forward exactly."""
    vel = jnp.concatenate([y_t, y_0_hat], axis=-1)

    def cond_linear(h, w, b, e_table, cw, cb):
        out = jnp.einsum("bsd,dh->bsh", h, w) + b             # (B,S,H)
        gamma = e_table[t][:, None, :]                        # (B,1,H)
        out = out * gamma
        cov_gamma = (cov_embedding @ cw + cb)[:, None, :]     # (B,1,H)
        return out * (1.0 + cov_gamma)

    h = jax.nn.softplus(cond_linear(vel, params["w1"], params["b1"], params["e1"],
                                    params["cw1"], params["cb1"]))
    h = jax.nn.softplus(cond_linear(h, params["w2"], params["b2"], params["e2"],
                                    params["cw2"], params["cb2"]))
    h = jax.nn.softplus(cond_linear(h, params["w3"], params["b3"], params["e3"],
                                    params["cw3"], params["cb3"]))
    return jnp.einsum("bsh,ho->bso", h, params["w4"]) + params["b4"]


def init_params(key, d_in, n_steps, cov_dim, hidden=HIDDEN):
    ks = jax.random.split(key, 16)

    def lin(kw, kb, fan_in, fan_out):
        bound = 1.0 / jnp.sqrt(fan_in)
        w = jax.random.uniform(kw, (fan_in, fan_out), jnp.float32, -bound, bound)
        b = jax.random.uniform(kb, (1, fan_out), jnp.float32, -bound, bound)
        return w, b

    w1, b1 = lin(ks[0], ks[1], d_in, hidden)
    w2, b2 = lin(ks[2], ks[3], hidden, hidden)
    w3, b3 = lin(ks[4], ks[5], hidden, hidden)
    w4, b4 = lin(ks[6], ks[7], hidden, 1)
    cw1, cb1 = lin(ks[8], ks[9], cov_dim, hidden)
    cw2, cb2 = lin(ks[10], ks[11], cov_dim, hidden)
    cw3, cb3 = lin(ks[12], ks[13], cov_dim, hidden)
    # nn.Embedding weight re-initialized with uniform_() -> U[0, 1)
    e1 = jax.random.uniform(jax.random.fold_in(ks[14], 1), (n_steps, hidden), jnp.float32)
    e2 = jax.random.uniform(jax.random.fold_in(ks[14], 2), (n_steps, hidden), jnp.float32)
    e3 = jax.random.uniform(jax.random.fold_in(ks[14], 3), (n_steps, hidden), jnp.float32)
    return dict(w1=w1, b1=b1, w2=w2, b2=b2, w3=w3, b3=b3, w4=w4, b4=b4,
                cw1=cw1, cb1=cb1, cw2=cw2, cb2=cb2, cw3=cw3, cb3=cb3,
                e1=e1, e2=e2, e3=e3)


if __name__ == "__main__":
    # small shapes consistent with the module:
    #   cat_x=True, cat_y_pred=True -> data_dim = 2 * glucose_channels = 2
    B, S = 2, 8
    n_steps = 11          # config.diffusion.timesteps (=10) + 1
    cov_dim = 64          # MTS_args.d_model (kept small)

    key = jax.random.PRNGKey(0)
    k_yt, k_y0, k_t, k_cov, k_par = jax.random.split(key, 5)

    y_t = jax.random.normal(k_yt, (B, S, 1), jnp.float32)
    y_0_hat = jax.random.normal(k_y0, (B, S, 1), jnp.float32)
    t = jax.random.randint(k_t, (B,), 0, n_steps, dtype=jnp.int32)
    cov_embedding = jax.random.normal(k_cov, (B, cov_dim), jnp.float32)

    params = init_params(k_par, d_in=2, n_steps=n_steps, cov_dim=cov_dim)

    out = conditional_velocity_forward(y_t, y_0_hat, t, cov_embedding, params)
    out = jax.block_until_ready(out)

    ref = reference_forward(y_t, y_0_hat, t, cov_embedding, params)
    assert out.shape == (B, S, 1)
    assert jnp.allclose(out, ref, atol=1e-4, rtol=1e-4), "Pallas output mismatch vs reference"

    print("KERNEL_OK")
</pallas_src>

<mosaic_0001>
module attributes {stable_mosaic.version = 11 : i64} {
  func.func @_velocity_kernel(%arg0: i32, %arg1: memref<16x8xf32, #tpu.memory_space<vmem>>, %arg2: memref<16x8xf32, #tpu.memory_space<vmem>>, %arg3: memref<16x128xf32, #tpu.memory_space<vmem>>, %arg4: memref<16x128xf32, #tpu.memory_space<vmem>>, %arg5: memref<16x128xf32, #tpu.memory_space<vmem>>, %arg6: memref<2x128xf32, #tpu.memory_space<vmem>>, %arg7: memref<1x128xf32, #tpu.memory_space<vmem>>, %arg8: memref<128x128xf32, #tpu.memory_space<vmem>>, %arg9: memref<1x128xf32, #tpu.memory_space<vmem>>, %arg10: memref<128x128xf32, #tpu.memory_space<vmem>>, %arg11: memref<1x128xf32, #tpu.memory_space<vmem>>, %arg12: memref<1x128xf32, #tpu.memory_space<vmem>>, %arg13: memref<1x1xf32, #tpu.memory_space<vmem>>, %arg14: memref<1x1x128xf32, #tpu.memory_space<vmem>>) attributes {dimension_semantics = [#tpu.dimension_semantics<parallel>], iteration_bounds = array<i64: 1>, scalar_prefetch = 0 : i64, scratch_operands = 0 : i64, tpu.core_type = #tpu.core_type<tc>, window_params = [{transform_indices = @transform_0, window_bounds = array<i64: 16, 8>}, {transform_indices = @transform_1, window_bounds = array<i64: 16, 8>}, {transform_indices = @transform_2, window_bounds = array<i64: 16, 128>}, {transform_indices = @transform_3, window_bounds = array<i64: 16, 128>}, {transform_indices = @transform_4, window_bounds = array<i64: 16, 128>}, {pipeline_mode = #tpu.pipeline_mode<synchronous>, transform_indices = @transform_5, window_bounds = array<i64: 2, 128>}, {pipeline_mode = #tpu.pipeline_mode<synchronous>, transform_indices = @transform_6, window_bounds = array<i64: 1, 128>}, {pipeline_mode = #tpu.pipeline_mode<synchronous>, transform_indices = @transform_7, window_bounds = array<i64: 128, 128>}, {pipeline_mode = #tpu.pipeline_mode<synchronous>, transform_indices = @transform_8, window_bounds = array<i64: 1, 128>}, {pipeline_mode = #tpu.pipeline_mode<synchronous>, transform_indices = @transform_9, window_bounds = array<i64: 128, 128>}, {pipeline_mode = #tpu.pipeline_mode<synchronous>, transform_indices = @transform_10, window_bounds = array<i64: 1, 128>}, {pipeline_mode = #tpu.pipeline_mode<synchronous>, transform_indices = @transform_11, window_bounds = array<i64: 1, 128>}, {pipeline_mode = #tpu.pipeline_mode<synchronous>, transform_indices = @transform_12, window_bounds = array<i64: 1, 1>}, {transform_indices = @transform_13, window_bounds = array<i64: 1, 1, 128>}]} {
    %c0 = arith.constant 0 : index
    %c0_0 = arith.constant 0 : index
    %0 = vector.load %arg1[%c0, %c0_0] : memref<16x8xf32, #tpu.memory_space<vmem>>, vector<16x8xf32>
    %c0_1 = arith.constant 0 : index
    %c0_2 = arith.constant 0 : index
    %1 = vector.load %arg2[%c0_1, %c0_2] : memref<16x8xf32, #tpu.memory_space<vmem>>, vector<16x8xf32>
    %c0_3 = arith.constant 0 : index
    %c0_4 = arith.constant 0 : index
    %2 = vector.load %arg6[%c0_3, %c0_4] : memref<2x128xf32, #tpu.memory_space<vmem>>, vector<1x128xf32>
    %c1 = arith.constant 1 : index
    %c0_5 = arith.constant 0 : index
    %3 = vector.load %arg6[%c1, %c0_5] : memref<2x128xf32, #tpu.memory_space<vmem>>, vector<1x128xf32>
    %c0_6 = arith.constant 0 : index
    %c0_7 = arith.constant 0 : index
    %4 = vector.load %arg7[%c0_6, %c0_7] : memref<1x128xf32, #tpu.memory_space<vmem>>, vector<1x128xf32>
    %5 = vector.shape_cast %0 : vector<16x8xf32> to vector<16x8x1xf32>
    %6 = vector.shape_cast %2 : vector<1x128xf32> to vector<1x1x128xf32>
    %7 = vector.broadcast %5 : vector<16x8x1xf32> to vector<16x8x128xf32>
    %8 = vector.broadcast %6 : vector<1x1x128xf32> to vector<16x8x128xf32>
    %9 = arith.mulf %7, %8 : vector<16x8x128xf32>
    %10 = vector.shape_cast %1 : vector<16x8xf32> to vector<16x8x1xf32>
    %11 = vector.shape_cast %3 : vector<1x128xf32> to vector<1x1x128xf32>
    %12 = vector.broadcast %10 : vector<16x8x1xf32> to vector<16x8x128xf32>
    %13 = vector.broadcast %11 : vector<1x1x128xf32> to vector<16x8x128xf32>
    %14 = arith.mulf %12, %13 : vector<16x8x128xf32>
    %15 = arith.addf %9, %14 : vector<16x8x128xf32>
    %16 = vector.shape_cast %4 : vector<1x128xf32> to vector<1x1x128xf32>
    %17 = vector.broadcast %16 : vector<1x1x128xf32> to vector<16x8x128xf32>
    %18 = arith.addf %15, %17 : vector<16x8x128xf32>
    %c0_8 = arith.constant 0 : index
    %c0_9 = arith.constant 0 : index
    %19 = vector.load %arg3[%c0_8, %c0_9] : memref<16x128xf32, #tpu.memory_space<vmem>>, vector<16x128xf32>
    %20 = vector.shape_cast %19 : vector<16x128xf32> to vector<16x1x128xf32>
    %21 = vector.broadcast %20 : vector<16x1x128xf32> to vector<16x8x128xf32>
    %22 = arith.mulf %18, %21 : vector<16x8x128xf32>
    %cst = arith.constant 0.000000e+00 : f32
    %23 = vector.broadcast %cst : f32 to vector<16x8x128xf32>
    %24 = arith.maximumf %22, %23 : vector<16x8x128xf32>
    %25 = math.absf %22 : vector<16x8x128xf32>
    %cst_10 = arith.constant 0.000000e+00 : f32
    %26 = vector.broadcast %cst_10 : f32 to vector<16x8x128xf32>
    %27 = arith.subf %26, %25 : vector<16x8x128xf32>
    %28 = math.exp %27 : vector<16x8x128xf32>
    %29 = math.log1p %28 : vector<16x8x128xf32>
    %30 = arith.addf %24, %29 : vector<16x8x128xf32>
    %31 = vector.shape_cast %30 : vector<16x8x128xf32> to vector<128x128xf32>
    %c0_11 = arith.constant 0 : index
    %c0_12 = arith.constant 0 : index
    %32 = vector.load %arg8[%c0_11, %c0_12] : memref<128x128xf32, #tpu.memory_space<vmem>>, vector<128x128xf32>
    %cst_13 = arith.constant dense<0.000000e+00> : vector<128x128xf32>
    %33 = tpu.matmul %31, %32, %cst_13 {dimension_numbers = #tpu.dot_dimension_numbers<[1], [0], [0], [1], [0, 0, 1, 1], [], []>} : vector<128x128xf32>, vector<128x128xf32>, vector<128x128xf32> -> vector<128x128xf32>
    %c0_14 = arith.constant 0 : index
    %c0_15 = arith.constant 0 : index
    %34 = vector.load %arg9[%c0_14, %c0_15] : memref<1x128xf32, #tpu.memory_space<vmem>>, vector<1x128xf32>
    %35 = vector.broadcast %34 : vector<1x128xf32> to vector<128x128xf32>
    %36 = arith.addf %33, %35 : vector<128x128xf32>
    %37 = vector.shape_cast %36 : vector<128x128xf32> to vector<16x8x128xf32>
    %c0_16 = arith.constant 0 : index
    %c0_17 = arith.constant 0 : index
    %38 = vector.load %arg4[%c0_16, %c0_17] : memref<16x128xf32, #tpu.memory_space<vmem>>, vector<16x128xf32>
    %39 = vector.shape_cast %38 : vector<16x128xf32> to vector<16x1x128xf32>
    %40 = vector.broadcast %39 : vector<16x1x128xf32> to vector<16x8x128xf32>
    %41 = arith.mulf %37, %40 : vector<16x8x128xf32>
    %cst_18 = arith.constant 0.000000e+00 : f32
    %42 = vector.broadcast %cst_18 : f32 to vector<16x8x128xf32>
    %43 = arith.maximumf %41, %42 : vector<16x8x128xf32>
    %44 = math.absf %41 : vector<16x8x128xf32>
    %cst_19 = arith.constant 0.000000e+00 : f32
    %45 = vector.broadcast %cst_19 : f32 to vector<16x8x128xf32>
    %46 = arith.subf %45, %44 : vector<16x8x128xf32>
    %47 = math.exp %46 : vector<16x8x128xf32>
    %48 = math.log1p %47 : vector<16x8x128xf32>
    %49 = arith.addf %43, %48 : vector<16x8x128xf32>
    %50 = vector.shape_cast %49 : vector<16x8x128xf32> to vector<128x128xf32>
    %c0_20 = arith.constant 0 : index
    %c0_21 = arith.constant 0 : index
    %51 = vector.load %arg10[%c0_20, %c0_21] : memref<128x128xf32, #tpu.memory_space<vmem>>, vector<128x128xf32>
    %cst_22 = arith.constant dense<0.000000e+00> : vector<128x128xf32>
    %52 = tpu.matmul %50, %51, %cst_22 {dimension_numbers = #tpu.dot_dimension_numbers<[1], [0], [0], [1], [0, 0, 1, 1], [], []>} : vector<128x128xf32>, vector<128x128xf32>, vector<128x128xf32> -> vector<128x128xf32>
    %c0_23 = arith.constant 0 : index
    %c0_24 = arith.constant 0 : index
    %53 = vector.load %arg11[%c0_23, %c0_24] : memref<1x128xf32, #tpu.memory_space<vmem>>, vector<1x128xf32>
    %54 = vector.broadcast %53 : vector<1x128xf32> to vector<128x128xf32>
    %55 = arith.addf %52, %54 : vector<128x128xf32>
    %56 = vector.shape_cast %55 : vector<128x128xf32> to vector<16x8x128xf32>
    %c0_25 = arith.constant 0 : index
    %c0_26 = arith.constant 0 : index
    %57 = vector.load %arg5[%c0_25, %c0_26] : memref<16x128xf32, #tpu.memory_space<vmem>>, vector<16x128xf32>
    %58 = vector.shape_cast %57 : vector<16x128xf32> to vector<16x1x128xf32>
    %59 = vector.broadcast %58 : vector<16x1x128xf32> to vector<16x8x128xf32>
    %60 = arith.mulf %56, %59 : vector<16x8x128xf32>
    %cst_27 = arith.constant 0.000000e+00 : f32
    %61 = vector.broadcast %cst_27 : f32 to vector<16x8x128xf32>
    %62 = arith.maximumf %60, %61 : vector<16x8x128xf32>
    %63 = math.absf %60 : vector<16x8x128xf32>
    %cst_28 = arith.constant 0.000000e+00 : f32
    %64 = vector.broadcast %cst_28 : f32 to vector<16x8x128xf32>
    %65 = arith.subf %64, %63 : vector<16x8x128xf32>
    %66 = math.exp %65 : vector<16x8x128xf32>
    %67 = math.log1p %66 : vector<16x8x128xf32>
    %68 = arith.addf %62, %67 : vector<16x8x128xf32>
    %69 = vector.shape_cast %68 : vector<16x8x128xf32> to vector<128x128xf32>
    %c0_29 = arith.constant 0 : index
    %c0_30 = arith.constant 0 : index
    %70 = vector.load %arg12[%c0_29, %c0_30] : memref<1x128xf32, #tpu.memory_space<vmem>>, vector<1x128xf32>
    %cst_31 = arith.constant dense<0.000000e+00> : vector<1x128xf32>
    %71 = tpu.matmul %70, %69, %cst_31 {dimension_numbers = #tpu.dot_dimension_numbers<[1], [1], [0], [0], [0, 0, 1, 0], [], []>} : vector<1x128xf32>, vector<128x128xf32>, vector<1x128xf32> -> vector<1x128xf32>
    %c0_32 = arith.constant 0 : index
    %c0_33 = arith.constant 0 : index
    %72 = vector.load %arg13[%c0_32, %c0_33] : memref<1x1xf32, #tpu.memory_space<vmem>>, vector<1x1xf32>
    %73 = vector.broadcast %72 : vector<1x1xf32> to vector<1x128xf32>
    %74 = arith.addf %71, %73 : vector<1x128xf32>
    %c0_34 = arith.constant 0 : index
    %c0_35 = arith.constant 0 : index
    %c0_36 = arith.constant 0 : index
    %75 = vector.load %arg14[%c0_34, %c0_35, %c0_36] : memref<1x1x128xf32, #tpu.memory_space<vmem>>, vector<1x1x128xf32>
    %76 = vector.shape_cast %75 : vector<1x1x128xf32> to vector<1x128xf32>
    %77 = vector.shape_cast %74 : vector<1x128xf32> to vector<1x1x128xf32>
    tpu.vector_store %arg14[%c0_34, %c0_35, %c0_36], %77 {strides = array<i32>} : memref<1x1x128xf32, #tpu.memory_space<vmem>>, vector<1x1x128xf32>,
    return
  }
  func.func @transform_0(%arg0: i32) -> (i32, i32) {
    %c0_i32 = arith.constant 0 : i32
    %c0_i32_0 = arith.constant 0 : i32
    return %arg0, %c0_i32 : i32, i32
  }
  func.func @transform_1(%arg0: i32) -> (i32, i32) {
    %c0_i32 = arith.constant 0 : i32
    %c0_i32_0 = arith.constant 0 : i32
    return %arg0, %c0_i32 : i32, i32
  }
  func.func @transform_2(%arg0: i32) -> (i32, i32) {
    %c0_i32 = arith.constant 0 : i32
    %c0_i32_0 = arith.constant 0 : i32
    return %arg0, %c0_i32 : i32, i32
  }
  func.func @transform_3(%arg0: i32) -> (i32, i32) {
    %c0_i32 = arith.constant 0 : i32
    %c0_i32_0 = arith.constant 0 : i32
    return %arg0, %c0_i32 : i32, i32
  }
  func.func @transform_4(%arg0: i32) -> (i32, i32) {
    %c0_i32 = arith.constant 0 : i32
    %c0_i32_0 = arith.constant 0 : i32
    return %arg0, %c0_i32 : i32, i32
  }
  func.func @transform_5(%arg0: i32) -> (i32, i32) {
    %c0_i32 = arith.constant 0 : i32
    %c0_i32_0 = arith.constant 0 : i32
    %c0_i32_1 = arith.constant 0 : i32
    return %c0_i32, %c0_i32_0 : i32, i32
  }
  func.func @transform_6(%arg0: i32) -> (i32, i32) {
    %c0_i32 = arith.constant 0 : i32
    %c0_i32_0 = arith.constant 0 : i32
    %c0_i32_1 = arith.constant 0 : i32
    return %c0_i32, %c0_i32_0 : i32, i32
  }
  func.func @transform_7(%arg0: i32) -> (i32, i32) {
    %c0_i32 = arith.constant 0 : i32
    %c0_i32_0 = arith.constant 0 : i32
    %c0_i32_1 = arith.constant 0 : i32
    return %c0_i32, %c0_i32_0 : i32, i32
  }
  func.func @transform_8(%arg0: i32) -> (i32, i32) {
    %c0_i32 = arith.constant 0 : i32
    %c0_i32_0 = arith.constant 0 : i32
    %c0_i32_1 = arith.constant 0 : i32
    return %c0_i32, %c0_i32_0 : i32, i32
  }
  func.func @transform_9(%arg0: i32) -> (i32, i32) {
    %c0_i32 = arith.constant 0 : i32
    %c0_i32_0 = arith.constant 0 : i32
    %c0_i32_1 = arith.constant 0 : i32
    return %c0_i32, %c0_i32_0 : i32, i32
  }
  func.func @transform_10(%arg0: i32) -> (i32, i32) {
    %c0_i32 = arith.constant 0 : i32
    %c0_i32_0 = arith.constant 0 : i32
    %c0_i32_1 = arith.constant 0 : i32
    return %c0_i32, %c0_i32_0 : i32, i32
  }
  func.func @transform_11(%arg0: i32) -> (i32, i32) {
    %c0_i32 = arith.constant 0 : i32
    %c0_i32_0 = arith.constant 0 : i32
    %c0_i32_1 = arith.constant 0 : i32
    return %c0_i32, %c0_i32_0 : i32, i32
  }
  func.func @transform_12(%arg0: i32) -> (i32, i32) {
    %c0_i32 = arith.constant 0 : i32
    %c0_i32_0 = arith.constant 0 : i32
    %c0_i32_1 = arith.constant 0 : i32
    return %c0_i32, %c0_i32_0 : i32, i32
  }
  func.func @transform_13(%arg0: i32) -> (i32, i32, i32) {
    %c0_i32 = arith.constant 0 : i32
    %c0_i32_0 = arith.constant 0 : i32
    %c0_i32_1 = arith.constant 0 : i32
    return %arg0, %c0_i32, %c0_i32_0 : i32, i32, i32
  }
}

</mosaic_0001>

<bundles_post_ra>
// kernel: tpu_custom_call.1
= control target key start
LH: loop header
LB: loop body
LE: loop exit
PB: predicated region body
PF: predicated region fallthrough
CT: control target
= control target key end

     0   :  { %s3854_s0 = inlined_call_operand.vmem [shape: f32[16,8], index: 0, kind: input, shape index: {}]   ;;  %s3855_s1 = inlined_call_operand.vmem [shape: f32[16,8], index: 1, kind: input, shape index: {}]   ;;  %s3856_s2 = inlined_call_operand.vmem [shape: f32[16,128], index: 2, kind: input, shape index: {}]   ;;  %s3857_s3 = inlined_call_operand.vmem [shape: f32[16,128], index: 3, kind: input, shape index: {}]   ;;  %s3858_s4 = inlined_call_operand.vmem [shape: f32[16,128], index: 4, kind: input, shape index: {}]   ;;  %s3859_s5 = inlined_call_operand.vmem [shape: f32[2,128], index: 5, kind: input, shape index: {}]   ;;  %s3860_s6 = inlined_call_operand.vmem [shape: f32[1,128], index: 6, kind: input, shape index: {}]   ;;  %s3861_s7 = inlined_call_operand.hbm [shape: f32[128,128], index: 7, kind: input, shape index: {}]   ;;  %s3862_s8 = inlined_call_operand.vmem [shape: f32[1,128], index: 8, kind: input, shape index: {}]   ;;  %s3863_s9 = inlined_call_operand.hbm [shape: f32[128,128], index: 9, kind: input, shape index: {}]   ;;  %s3864_s10 = inlined_call_operand.vmem [shape: f32[1,128], index: 10, kind: input, shape index: {}]   ;;  %s3865_s11 = inlined_call_operand.vmem [shape: f32[1,128], index: 11, kind: input, shape index: {}]   ;;  %s3866_s12 = inlined_call_operand.<no memory space> [shape: f32[1,1], index: 12, kind: input, shape index: {}]   ;;  %s3867_s13 = inlined_call_operand.hbm [shape: f32[1,1,128], index: 13, kind: output, shape index: {}]  }
   0x1   :  { %v18_v0 = vstv %s3866_s12 }
   0x2   :  { %19 = vst [vmem:[#allocation2] sm:$0x1] %v18_v0 }
   0x3   :  { %20 = vsyncpa [#allocation4], 0 }
   0x4   :  { %21 = vsyncpa [#allocation7], 0 }
   0x5   :  { %22 = vsyncpa [#allocation5], 0  ;;  %s2734_s27 = smov [#allocation3]   ;;  %s2662_s14 = scalar_lea.hbm %s3861_s7, 2048 }
   0x6   :  { %s42_s28 = sshll.u32 %s2734_s27, 4  ;;  %p2663_p0 = scmp.ne.s32.totalorder %s3861_s7, %s2662_s14  ;;  %s43_s28 = int_to_ptr.vmem [resolvable:$true] %s42_s28 }
   0x7   :  { %p2666_p1 = scmp.lt.u32.totalorder %s2662_s14, %s3861_s7 }
   0x9   :  { %p2668_p2 = pnand %p2666_p1, %p2663_p0 }
   0xb   :  { %2671 = shalt.err (!%p2668_p2)
}
   0xc   :  { %s2672_s12 = scalar_lea.vmem %s43_s28, 2048  ;;  %p2677_p4 = scmp.lt.s32.totalorder %s43_s28, %s43_s28 }
   0xd   :  { %p2673_p3 = scmp.ne.s32.totalorder %s43_s28, %s2672_s12  ;;  %p2678_p5 = scmp.lt.s32.totalorder %s2672_s12, %s2672_s12 }
   0xf   :  { %p2679_p6 = por %p2678_p5, %p2677_p4 }
  0x11   :  { %p2680_p7 = pnand %p2679_p6, %p2673_p3 }
  0x13   :  { %2683 = shalt.err (!%p2680_p7)
}
  0x14   :  { %s2735_s19 = smov 128   ;;  %s2736_s20 = smov 8  }
  0x15   :  { %48 = dma.hbm_to_vmem [thread:$0]  %s3861_s7, 2048, %s43_s28, [#allocation4], %s2735_s19, %s2735_s19, %s2736_s20  }
  0x16   :  { %s2737_s23 = smov [#allocation6]   ;;  %s2684_s27 = scalar_lea.hbm %s3863_s9, 2048 }
  0x17   :  { %s56_s24 = sshll.u32 %s2737_s23, 4  ;;  %p2685_p8 = scmp.ne.s32.totalorder %s3863_s9, %s2684_s27  ;;  %s57_s24 = int_to_ptr.vmem [resolvable:$true] %s56_s24 }
  0x18   :  { %p2688_p9 = scmp.lt.u32.totalorder %s2684_s27, %s3863_s9 }
  0x1a   :  { %p2690_p10 = pnand %p2688_p9, %p2685_p8 }
  0x1c   :  { %2693 = shalt.err (!%p2690_p10)
}
  0x1d   :  { %s2694_s16 = scalar_lea.vmem %s57_s24, 2048  ;;  %p2699_p12 = scmp.lt.s32.totalorder %s57_s24, %s57_s24 }
  0x1e   :  { %p2695_p11 = scmp.ne.s32.totalorder %s57_s24, %s2694_s16  ;;  %p2700_p13 = scmp.lt.s32.totalorder %s2694_s16, %s2694_s16 }
  0x20   :  { %p2701_p0 = por %p2700_p13, %p2699_p12 }
  0x22   :  { %p2702_p1 = pnand %p2701_p0, %p2695_p11 }
  0x24   :  { %2705 = shalt.err (!%p2702_p1)
}
  0x25   :  { %62 = dma.hbm_to_vmem [thread:$0]  %s3863_s9, 2048, %s57_s24, [#allocation7], %s2735_s19, %s2735_s19, %s2736_s20  }
  0x26   :  { %2728 = dma.done.wait [#allocation4], 2048  }
  0x27   :  { %2729 = vsyncadd [#allocation4], 4294965248 }
  0x28   :  { %2730 = dma.done.wait [#allocation7], 2048  }
  0x29   :  { %2731 = vsyncadd [#allocation7], 4294965248  ;;  %v82_v1 = vlaneseq  ;;  %v2852_v5 = vld [vmem:[%s3854_s0] sm:$0xff]  ;;  %v823_v16 = vld [vmem:[#allocation3 + $0x8] sm:$0xff]  ;;  %s2743_s9 = smov [#allocation8]  }
  0x2a   :  { %v2857_v6 = vld [vmem:[%s3855_s1] sm:$0xff]  ;;  %v824_v17 = vld [vmem:[#allocation3 + $0x10] sm:$0xff]  ;;  %v827_v25 = vld [vmem:[#allocation3 + $0x28] sm:$0xff]  ;;  %s2122_s19 = sshll.u32 %s2743_s9, 4  ;;  %s2123_s19 = int_to_ptr.vmem [resolvable:$true] %s2122_s19 }
  0x2b   :  { %v2841_v2 = vshrl.u32 %v82_v1, 7  ;;  %v822_v15 = vld [vmem:[#allocation3] sm:$0xff]  ;;  %v825_v18 = vld [vmem:[#allocation3 + $0x18] sm:$0xff]  ;;  %v828_v30 = vld [vmem:[#allocation3 + $0x30] sm:$0xff]  ;;  %s2706_s20 = scalar_lea.vmem %s2123_s19, 16  ;;  %s2710_s21 = scalar_lea.vmem %s2123_s19, 32 }
  0x2c   :  { %v2365_v19 = vpack.c.bf16 %v823_v16, %v822_v15  ;;  %v2369_v20 = vpack.c.bf16 %v825_v18, %v824_v17  ;;  %v826_v24 = vld [vmem:[#allocation3 + $0x20] sm:$0xff]  ;;  %v829_v31 = vld [vmem:[#allocation3 + $0x38] sm:$0xff]  ;;  %v831_v37 = vld [vmem:[#allocation3 + $0x48] sm:$0xff]  ;;  %p2707_p2 = scmp.ne.s32.totalorder %s2123_s19, %s2706_s20  ;;  %p2711_p3 = scmp.lt.s32.totalorder %s2123_s19, %s2123_s19 }
  0x2d   :  { %v2844_v3 = vsub.s32 0, %v2841_v2  ;;  %v2847_v4 = vsub.s32 1, %v2841_v2  ;;  %v2868_v11 = vsub.s32 2, %v2841_v2  ;;  %v2875_v14 = vsub.s32 3, %v2841_v2  ;;  %v830_v36 = vld [vmem:[#allocation3 + $0x40] sm:$0xff]  ;;  %v832_v42 = vld [vmem:[#allocation3 + $0x50] sm:$0xff]  ;;  %p2712_p4 = scmp.lt.s32.totalorder %s2710_s21, %s2706_s20 }
  0x2e   :  { %v2882_v23 = vsub.s32 4, %v2841_v2  ;;  %2366 = vmatprep.subr.bf16.mxu1 %v2365_v19  ;;  %v2373_v26 = vpack.c.bf16 %v827_v25, %v826_v24  ;;  %v2889_v29 = vsub.s32 5, %v2841_v2  ;;  %v2377_v32 = vpack.c.bf16 %v829_v31, %v828_v30  ;;  %v833_v43 = vld [vmem:[#allocation3 + $0x58] sm:$0xff]  ;;  %v78_v47 = vld [vmem:[%s3855_s1 + $0x8] sm:$0xff]  ;;  %v836_v54 = vld [vmem:[#allocation3 + $0x70] sm:$0xff] }
  0x2f   :  { %v92_v7 = vrot.slane %v2852_v5, %v2847_v4  ;;  %v85_v8 = vrot.slane %v2852_v5, %v2844_v3  ;;  %v224_v9 = vrot.slane %v2857_v6, %v2847_v4  ;;  %v217_v10 = vrot.slane %v2857_v6, %v2844_v3  ;;  %2368 = vmatpush3.bf16.msra.mxu1 %v2365_v19  ;;  %v76_v48 = vld [vmem:[%s3854_s0 + $0x8] sm:$0xff]  ;;  %v837_v55 = vld [vmem:[#allocation3 + $0x78] sm:$0xff]  ;;  %v2940_v19 = vld [vmem:[%s3859_s5 + $0x1] ss:$0 sm:$0xff]  ;;  %p2713_p5 = por %p2712_p4, %p2711_p3 }
  0x30   :  { %v231_v12 = vrot.slane %v2857_v6, %v2868_v11  ;;  %v99_v13 = vrot.slane %v2852_v5, %v2868_v11  ;;  %v238_v21 = vrot.slane %v2857_v6, %v2875_v14  ;;  %v106_v22 = vrot.slane %v2852_v5, %v2875_v14  ;;  %2370 = vmatprep.subr.bf16.mxu1 %v2369_v20  ;;  %v834_v49 = vld [vmem:[#allocation3 + $0x60] sm:$0xff]  ;;  %v835_v50 = vld [vmem:[#allocation3 + $0x68] sm:$0xff]  ;;  %v2935_v18 = vld [vmem:[%s3859_s5] ss:$0 sm:$0xff] }
  0x31   :  { %94 = vbcast.lane.b32.xlu1 %v92_v7, 256  ;;  %87 = vbcast.lane.b32.xlu0 %v85_v8, 256  ;;  %v245_v27 = vrot.slane %v2857_v6, %v2882_v23  ;;  %v113_v28 = vrot.slane %v2852_v5, %v2882_v23  ;;  %v252_v33 = vrot.slane %v2857_v6, %v2889_v29  ;;  %v2896_v35 = vsub.s32 6, %v2841_v2  ;;  %p2714_p6 = pnand %p2713_p5, %p2707_p2 }
  0x32   :  { %v120_v34 = vrot.slane %v2852_v5, %v2889_v29  ;;  %v2381_v38 = vpack.c.bf16 %v831_v37, %v830_v36  ;;  %v133_v41 = vsub.s32 7, %v2841_v2  ;;  %v2385_v44 = vpack.c.bf16 %v833_v43, %v832_v42 }
  0x33   :  { %2372 = vmatpush3.bf16.msra.mxu1 %v2369_v20  ;;  %v259_v39 = vrot.slane %v2857_v6, %v2896_v35  ;;  %v127_v40 = vrot.slane %v2852_v5, %v2896_v35  ;;  %v2389_v51 = vpack.c.bf16 %v835_v50, %v834_v49  ;;  %v273_v52 = vrot.slane %v78_v47, %v2844_v3 }
  0x34   :  { %2374 = vmatprep.subr.bf16.mxu1 %v2373_v26  ;;  %v266_v45 = vrot.slane %v2857_v6, %v133_v41  ;;  %v134_v46 = vrot.slane %v2852_v5, %v133_v41  ;;  %v141_v53 = vrot.slane %v76_v48, %v2844_v3  ;;  %v2393_v56 = vpack.c.bf16 %v837_v55, %v836_v54 }
  0x35   :  { %226 = vbcast.lane.b32.xlu1 %v224_v9, 256  ;;  %219 = vbcast.lane.b32.xlu0 %v217_v10, 256  ;;  %v280_v57 = vrot.slane %v78_v47, %v2847_v4  ;;  %v148_v58 = vrot.slane %v76_v48, %v2847_v4  ;;  %v287_v59 = vrot.slane %v78_v47, %v2868_v11  ;;  %v2738_v9 = vmov 1966171168  }
  0x36   :  { %v155_v60 = vrot.slane %v76_v48, %v2868_v11  ;;  %v294_v61 = vrot.slane %v78_v47, %v2875_v14  ;;  %v162_v62 = vrot.slane %v76_v48, %v2875_v14  ;;  %v301_v63 = vrot.slane %v78_v47, %v2882_v23 }
  0x37   :  { %2376 = vmatpush3.bf16.msra.mxu1 %v2373_v26  ;;  %v169_v0 = vrot.slane %v76_v48, %v2882_v23  ;;  %v308_v1 = vrot.slane %v78_v47, %v2889_v29  ;;  %v176_v4 = vrot.slane %v76_v48, %v2889_v29  ;;  %v315_v5 = vrot.slane %v78_v47, %v2896_v35 }
  0x38   :  { %2378 = vmatprep.subr.bf16.mxu1 %v2377_v32  ;;  %v183_v6 = vrot.slane %v76_v48, %v2896_v35  ;;  %v322_v7 = vrot.slane %v78_v47, %v133_v41  ;;  %v190_v8 = vrot.slane %v76_v48, %v133_v41  ;;  %v390_v10 = vunpack.c.l.s4 %v2738_v9 }
  0x39   :  { %233 = vbcast.lane.b32.xlu1 %v231_v12, 256  ;;  %101 = vbcast.lane.b32.xlu0 %v99_v13, 256  ;;  %v384_v13 = vld [vmem:[%s3856_s2] sm:$0xff] }
  0x3a   :  { %v391_v11 = vunpack.c.0.s8 %v390_v10 }
  0x3b   :  { %2380 = vmatpush3.bf16.msra.mxu1 %v2377_v32 }
  0x3c   :  { %2382 = vmatprep.subr.bf16.mxu1 %v2381_v38  ;;  %v2926_v12 = vsub.s32 %v391_v11, %v2841_v2  ;;  %v388_v2 = vcombine.high %v384_v13, %v384_v13 }
  0x3d   :  { %240 = vbcast.lane.b32.xlu1 %v238_v21, 256  ;;  %108 = vbcast.lane.b32.xlu0 %v106_v22, 256 }
  0x3e   :  { %v395_v14 = vrot.slane %v384_v13, %v2926_v12  ;;  %v402_v30 = vrot.slane %v388_v2, %v2926_v12 }
  0x3f   :  { %2384 = vmatpush3.bf16.msra.mxu1 %v2381_v38 }
  0x40   :  { %2386 = vmatprep.subr.bf16.mxu1 %v2385_v44  ;;  %v403_v15 = vcombine.high %v395_v14, %v395_v14  ;;  %v411_v21 = vrot.slane %v395_v14, %v2926_v12  ;;  %v418_v42 = vrot.slane %v402_v30, %v2926_v12  ;;  %v404_v50 = vcombine.high %v402_v30, %v402_v30 }
  0x41   :  { %247 = vbcast.lane.b32.xlu1 %v245_v27, 256  ;;  %115 = vbcast.lane.b32.xlu0 %v113_v28, 256  ;;  %v2951_v28 = vld [vmem:[%s3860_s6] ss:$0 sm:$0xff] }
  0x42   :  { %v425_v20 = vrot.slane %v403_v15, %v2926_v12  ;;  %v433_v29 = vcombine.high %v411_v21, %v411_v21  ;;  %v505_v55 = vrot.slane %v418_v42, %v2844_v3 }
  0x43   :  { %2388 = vmatpush3.bf16.msra.mxu1 %v2385_v44 }
  0x44   :  { %2390 = vmatprep.subr.bf16.mxu1 %v2389_v51  ;;  %v493_v31 = vrot.slane %v425_v20, %v2844_v3  ;;  %v497_v41 = vrot.slane %v433_v29, %v2844_v3 }
  0x45   :  { %254 = vbcast.lane.b32.xlu1 %v252_v33, 256  ;;  %122 = vbcast.lane.b32.xlu0 %v120_v34, 256  ;;  %v489_v34 = vrot.slane %v411_v21, %v2844_v3 }
  0x47   :  { %2392 = vmatpush3.bf16.msra.mxu1 %v2389_v51 }
  0x48   :  { %2394 = vmatprep.subr.bf16.mxu1 %v2393_v56 }
  0x49   :  { %261 = vbcast.lane.b32.xlu1 %v259_v39, 256  ;;  %129 = vbcast.lane.b32.xlu0 %v127_v40, 256 }
  0x4b   :  { %2396 = vmatpush3.bf16.msra.mxu1 %v2393_v56 }
  0x4d   :  { %268 = vbcast.lane.b32.xlu1 %v266_v45, 256  ;;  %136 = vbcast.lane.b32.xlu0 %v134_v46, 256  ;;  %v435_v45 = vcombine.high %v425_v20, %v425_v20  ;;  %v385_v46 = vld [vmem:[%s3856_s2 + $0x8] sm:$0xff] }
  0x4e   :  { %v444_v56 = vrot.slane %v385_v46, %v2926_v12 }
  0x50   :  { %v2988_v2 = vrot.slane %v444_v56, %v2926_v12 }
  0x51   :  { %275 = vbcast.lane.b32.xlu1 %v273_v52, 256  ;;  %143 = vbcast.lane.b32.xlu0 %v141_v53, 256 }
  0x55   :  { %282 = vbcast.lane.b32.xlu1 %v280_v57, 256  ;;  %150 = vbcast.lane.b32.xlu0 %v148_v58, 256  ;;  %v437_v58 = vcombine.high %v385_v46, %v385_v46 }
  0x57   :  { %v451_v15 = vrot.slane %v437_v58, %v2926_v12 }
  0x59   :  { %289 = vbcast.lane.b32.xlu1 %v287_v59, 256  ;;  %157 = vbcast.lane.b32.xlu0 %v155_v60, 256 }
  0x5d   :  { %296 = vbcast.lane.b32.xlu1 %v294_v61, 256  ;;  %164 = vbcast.lane.b32.xlu0 %v162_v62, 256  ;;  %v501_v61 = vrot.slane %v435_v45, %v2844_v3 }
  0x61   :  { %303 = vbcast.lane.b32.xlu1 %v301_v63, 256  ;;  %171 = vbcast.lane.b32.xlu0 %v169_v0, 256 }
  0x65   :  { %310 = vbcast.lane.b32.xlu1 %v308_v1, 256  ;;  %178 = vbcast.lane.b32.xlu0 %v176_v4, 256  ;;  %v432_v1 = vrot.slane %v404_v50, %v2926_v12  ;;  %v434_v4 = vcombine.high %v418_v42, %v418_v42  ;;  %v521_v50 = vrot.slane %v2988_v2, %v2844_v3 }
  0x67   :  { %v436_v13 = vcombine.high %v432_v1, %v432_v1 }
  0x69   :  { %317 = vbcast.lane.b32.xlu1 %v315_v5, 256  ;;  %185 = vbcast.lane.b32.xlu0 %v183_v6, 256  ;;  %v452_v5 = vcombine.high %v444_v56, %v444_v56 }
  0x6d   :  { %324 = vbcast.lane.b32.xlu1 %v322_v7, 256  ;;  %192 = vbcast.lane.b32.xlu0 %v190_v8, 256 }
  0xa3   :  { %v95_v16 = vpop.permute.xlu1 %94  ;;  %v88_v17 = vpop.permute.xlu0 %87 }
  0xa4   :  { %v199_v24 = vmul.f32 %v2935_v18, %v95_v16  ;;  %v198_v25 = vmul.f32 %v2935_v18, %v88_v17 }
  0xa7   :  { %v227_v22 = vpop.permute.xlu1 %226  ;;  %v220_v23 = vpop.permute.xlu0 %219 }
  0xa8   :  { %v331_v26 = vmul.f32 %v2940_v19, %v227_v22  ;;  %v330_v27 = vmul.f32 %v2940_v19, %v220_v23  ;;  %v2991_v23 = vrot.slane %v452_v5, %v2926_v12 }
  0xaa   :  { %v347_v32 = vadd.f32 %v331_v26, %v199_v24  ;;  %v346_v33 = vadd.f32 %v330_v27, %v198_v25  ;;  %v453_v24 = vcombine.high %v451_v15, %v451_v15 }
  0xab   :  { %v234_v35 = vpop.permute.xlu1 %233  ;;  %v102_v36 = vpop.permute.xlu0 %101 }
  0xac   :  { %v369_v37 = vadd.f32 %v2951_v28, %v347_v32  ;;  %v368_v38 = vadd.f32 %v2951_v28, %v346_v33  ;;  %v332_v39 = vmul.f32 %v2940_v19, %v234_v35  ;;  %v200_v40 = vmul.f32 %v2935_v18, %v102_v36 }
  0xad   :  { %v513_v32 = vrot.slane %v434_v4, %v2844_v3  ;;  %v517_v33 = vrot.slane %v436_v13, %v2844_v3  ;;  %v482_v36 = vcombine.high %v2988_v2, %v2988_v2  ;;  %v3010_v42 = vrot.slane %v453_v24, %v2926_v12 }
  0xae   :  { %v2962_v43 = vmul.f32 %v493_v31, %v369_v37  ;;  %v348_v44 = vadd.f32 %v332_v39, %v200_v40  ;;  %v2967_v47 = vmul.f32 %v489_v34, %v368_v38  ;;  %v509_v31 = vrot.slane %v432_v1, %v2844_v3 }
  0xaf   :  { %v241_v48 = vpop.permute.xlu1 %240  ;;  %v109_v49 = vpop.permute.xlu0 %108  ;;  %v484_v37 = vcombine.high %v2991_v23, %v2991_v23 }
  0xb0   :  { %v599_v51 = vand.u32 2147483647, %v2962_v43  ;;  %v370_v52 = vadd.f32 %v2951_v28, %v348_v44  ;;  %v333_v53 = vmul.f32 %v2940_v19, %v241_v48  ;;  %v201_v54 = vmul.f32 %v2935_v18, %v109_v49 }
  0xb1   :  { %v598_v57 = vand.u32 2147483647, %v2967_v47 }
  0xb2   :  { %v615_v59 = vsub.f32 0.0, %v599_v51  ;;  %v2976_v60 = vmul.f32 %v497_v41, %v370_v52  ;;  %v349_v62 = vadd.f32 %v333_v53, %v201_v54  ;;  %v3007_v41 = vrot.slane %v451_v15, %v2926_v12 }
  0xb3   :  { %v248_v63 = vpop.permute.xlu1 %247  ;;  %v116_v0 = vpop.permute.xlu0 %115  ;;  %v614_v6 = vsub.f32 0.0, %v598_v57  ;;  %v485_v52 = vcombine.high %v3010_v42, %v3010_v42 }
  0xb4   :  { %v632_v7 = vmul.f32 1.442695, %v615_v59  ;;  %v600_v8 = vand.u32 2147483647, %v2976_v60  ;;  %v371_v9 = vadd.f32 %v2951_v28, %v349_v62  ;;  %v334_v10 = vmul.f32 %v2940_v19, %v248_v63 }
  0xb5   :  { %v202_v11 = vmul.f32 %v2935_v18, %v116_v0  ;;  %v630_v14 = vmul.f32 1.442695, %v614_v6  ;;  %v483_v51 = vcombine.high %v3007_v41, %v3007_v41  ;;  %v3027_v59 = vrot.slane %v482_v36, %v2844_v3 }
  0xb6   :  { %2470 = vpow2.f32 %v632_v7  ;;  %v616_v16 = vsub.f32 0.0, %v600_v8  ;;  %v2985_v17 = vmul.f32 %v501_v61, %v371_v9  ;;  %v3030_v61 = vrot.slane %v484_v37, %v2844_v3 }
  0xb7   :  { %v350_v20 = vadd.f32 %v334_v10, %v202_v11  ;;  %v255_v21 = vpop.permute.xlu1 %254  ;;  %v123_v22 = vpop.permute.xlu0 %122  ;;  %2472 = vpow2.f32 %v630_v14  ;;  %v537_v62 = vrot.slane %v3007_v41, %v2844_v3  ;;  %v541_v8 = vrot.slane %v3010_v42, %v2844_v3 }
  0xb8   :  { %v634_v25 = vmul.f32 1.442695, %v616_v16  ;;  %v601_v26 = vand.u32 2147483647, %v2985_v17  ;;  %v335_v27 = vmul.f32 %v2940_v19, %v255_v21  ;;  %v203_v29 = vmul.f32 %v2935_v18, %v123_v22 }
  0xb9   :  { %v372_v30 = vadd.f32 %v2951_v28, %v350_v20  ;;  %v3045_v9 = vrot.slane %v483_v51, %v2844_v3  ;;  %v3048_v10 = vrot.slane %v485_v52, %v2844_v3  ;;  %v582_v21 = vmax.f32 %v2967_v47, 0.0 }
  0xba   :  { %v617_v34 = vsub.f32 0.0, %v601_v26  ;;  %v351_v35 = vadd.f32 %v335_v27, %v203_v29  ;;  %2474 = vpow2.f32 %v634_v25  ;;  %v583_v22 = vmax.f32 %v2962_v43, 0.0 }
  0xbb   :  { %v3004_v38 = vmul.f32 %v505_v55, %v372_v30  ;;  %v262_v39 = vpop.permute.xlu1 %261  ;;  %v130_v40 = vpop.permute.xlu0 %129  ;;  %v525_v55 = vrot.slane %v2991_v23, %v2844_v3 }
  0xbc   :  { %v636_v44 = vmul.f32 1.442695, %v617_v34  ;;  %v373_v45 = vadd.f32 %v2951_v28, %v351_v35  ;;  %v336_v46 = vmul.f32 %v2940_v19, %v262_v39  ;;  %v204_v48 = vmul.f32 %v2935_v18, %v130_v40 }
  0xbd   :  { %v602_v49 = vand.u32 2147483647, %v3004_v38  ;;  %v584_v34 = vmax.f32 %v2976_v60, 0.0  ;;  %v585_v39 = vmax.f32 %v2985_v17, 0.0 }
  0xbe   :  { %2476 = vpow2.f32 %v636_v44  ;;  %v3022_v53 = vmul.f32 %v509_v31, %v373_v45  ;;  %v352_v54 = vadd.f32 %v336_v46, %v204_v48 }
  0xbf   :  { %v618_v56 = vsub.f32 0.0, %v602_v49  ;;  %v269_v57 = vpop.permute.xlu1 %268  ;;  %v137_v58 = vpop.permute.xlu0 %136 }
  0xc0   :  { %v3034_v63 = vpop.eup %2470  ;;  %v603_v0 = vand.u32 2147483647, %v3022_v53  ;;  %v374_v1 = vadd.f32 %v2951_v28, %v352_v54  ;;  %v337_v4 = vmul.f32 %v2940_v19, %v269_v57  ;;  %v205_v5 = vmul.f32 %v2935_v18, %v137_v58 }
  0xc1   :  { %v3040_v6 = vpop.eup %2472  ;;  %v638_v7 = vmul.f32 1.442695, %v618_v56  ;;  %v671_v24 = vadd.f32 1.0, %v3034_v63  ;;  %v674_v25 = vmul.f32 -0.5, %v3034_v63  ;;  %v677_v37 = vand.u32 2147483647, %v3034_v63 }
  0xc2   :  { %v619_v11 = vsub.f32 0.0, %v603_v0  ;;  %v3050_v13 = vmul.f32 %v513_v32, %v374_v1  ;;  %v353_v14 = vadd.f32 %v337_v4, %v205_v5  ;;  %v662_v15 = vadd.f32 1.0, %v3040_v6 }
  0xc3   :  { %v276_v16 = vpop.permute.xlu1 %275  ;;  %v144_v20 = vpop.permute.xlu0 %143  ;;  %2478 = vpow2.f32 %v638_v7  ;;  %v665_v32 = vmul.f32 -0.5, %v3040_v6  ;;  %v668_v48 = vand.u32 2147483647, %v3040_v6  ;;  %v675_v54 = vadd.f32 1.0, %v674_v25 }
  0xc4   :  { %v604_v26 = vand.u32 2147483647, %v3050_v13  ;;  %v375_v27 = vadd.f32 %v2951_v28, %v353_v14  ;;  %v338_v29 = vmul.f32 %v2940_v19, %v276_v16  ;;  %v2475_v30 = vpop.eup %2474  ;;  %v206_v31 = vmul.f32 %v2935_v18, %v144_v20 }
  0xc5   :  { %2480 = vlog2.f32 %v662_v15  ;;  %v640_v35 = vmul.f32 1.442695, %v619_v11  ;;  %v666_v57 = vadd.f32 1.0, %v665_v32  ;;  %v680_v58 = vadd.f32 1.0, %v2475_v30 }
  0xc6   :  { %v3063_v36 = vmul.f32 %v517_v33, %v375_v27  ;;  %v620_v40 = vsub.f32 0.0, %v604_v26  ;;  %v354_v44 = vadd.f32 %v338_v29, %v206_v31  ;;  %2482 = vlog2.f32 %v671_v24 }
  0xc7   :  { %v283_v45 = vpop.permute.xlu1 %282  ;;  %v151_v46 = vpop.permute.xlu0 %150  ;;  %v683_v0 = vmul.f32 -0.5, %v2475_v30  ;;  %2484 = vpow2.f32 %v640_v35  ;;  %vm3080_vm0 = vcmp.lt.f32.partialorder %v668_v48, 0.0004427343  ;;  %v686_v26 = vand.u32 2147483647, %v2475_v30 }
  0xc8   :  { %v3068_v49 = vpop.eup %2476  ;;  %v605_v51 = vand.u32 2147483647, %v3063_v36  ;;  %v339_v52 = vmul.f32 %v2940_v19, %v283_v45  ;;  %v207_v33 = vmul.f32 %v2935_v18, %v151_v46  ;;  %v376_v56 = vadd.f32 %v2951_v28, %v354_v44 }
  0xc9   :  { %v689_v5 = vadd.f32 1.0, %v3068_v49  ;;  %v642_v7 = vmul.f32 1.442695, %v620_v40  ;;  %2486 = vlog2.f32 %v680_v58  ;;  %v684_v2 = vadd.f32 1.0, %v683_v0 }
  0xca   :  { %v621_v1 = vsub.f32 0.0, %v605_v51  ;;  %v355_v4 = vadd.f32 %v339_v52, %v207_v33  ;;  %v3078_v11 = vmul.f32 %v521_v50, %v376_v56  ;;  %v676_v35 = vmul.f32 %v3034_v63, %v675_v54 }
  0xcb   :  { %v290_v14 = vpop.permute.xlu1 %289  ;;  %v158_v15 = vpop.permute.xlu0 %157  ;;  %2488 = vlog2.f32 %v689_v5  ;;  %v692_v40 = vmul.f32 -0.5, %v3068_v49  ;;  %v667_v51 = vmul.f32 %v3040_v6, %v666_v57  ;;  %vm3098_vm1 = vcmp.lt.f32.partialorder %v677_v37, 0.0004427343 }
  0xcc   :  { %v377_v20 = vadd.f32 %v2951_v28, %v355_v4  ;;  %v340_v24 = vmul.f32 %v2940_v19, %v290_v14  ;;  %v208_v25 = vmul.f32 %v2935_v18, %v158_v15  ;;  %v644_v27 = vmul.f32 1.442695, %v621_v1 }
  0xcd   :  { %v606_v29 = vand.u32 2147483647, %v3078_v11  ;;  %v3088_v50 = vpop.eup %2478  ;;  %2490 = vpow2.f32 %v642_v7  ;;  %vm3106_vm2 = vcmp.lt.f32.partialorder %v686_v26, 0.0004427343  ;;  %v685_v6 = vmul.f32 %v2475_v30, %v684_v2 }
  0xce   :  { %v3093_v31 = vmul.f32 %v525_v55, %v377_v20  ;;  %v356_v32 = vadd.f32 %v340_v24, %v208_v25  ;;  %2492 = vpow2.f32 %v644_v27  ;;  %v698_v37 = vadd.f32 1.0, %v3088_v50 }
  0xcf   :  { %v2481_v44 = vpop.eup %2480  ;;  %v622_v45 = vsub.f32 0.0, %v606_v29  ;;  %v297_v46 = vpop.permute.xlu1 %296  ;;  %v693_v4 = vadd.f32 1.0, %v692_v40  ;;  %v695_v20 = vand.u32 2147483647, %v3068_v49  ;;  %v701_v24 = vmul.f32 -0.5, %v3088_v50 }
  0xd0   :  { %v165_v48 = vpop.permute.xlu0 %164  ;;  %v607_v23 = vand.u32 2147483647, %v3093_v31  ;;  %v378_v55 = vadd.f32 %v2951_v28, %v356_v32  ;;  %v341_v33 = vmul.f32 %v2940_v19, %v297_v46  ;;  %v2483_v56 = vpop.eup %2482  ;;  %v664_v58 = vmul.f32 0.6931472, %v2481_v44 }
  0xd1   :  { %v209_v63 = vmul.f32 %v2935_v18, %v165_v48  ;;  %v673_v1 = vmul.f32 0.6931472, %v2483_v56  ;;  %v646_v5 = vmul.f32 1.442695, %v622_v45  ;;  %v3118_v25 = vpop.eup %2484  ;;  %2494 = vlog2.f32 %v698_v37 }
  0xd2   :  { %v3112_v57 = vmul.f32 %v3027_v59, %v378_v55  ;;  %v670_v14 = vsel %vm3080_vm0, %v667_v51, %v664_v58  ;;  %v623_v30 = vsub.f32 0.0, %v607_v23  ;;  %v694_v46 = vmul.f32 %v3068_v49, %v693_v4 }
  0xd3   :  { %v357_v0 = vadd.f32 %v341_v33, %v209_v63  ;;  %v304_v7 = vpop.permute.xlu1 %303  ;;  %v2487_v29 = vpop.eup %2486  ;;  %v806_v2 = vadd.f32 %v670_v14, %v582_v21  ;;  %v679_v32 = vsel %vm3098_vm1, %v676_v35, %v673_v1  ;;  %2496 = vpow2.f32 %v646_v5 }
  0xd4   :  { %v172_v15 = vpop.permute.xlu0 %171  ;;  %v608_v26 = vand.u32 2147483647, %v3112_v57  ;;  %v342_v27 = vmul.f32 %v2940_v19, %v304_v7  ;;  %v807_v45 = vadd.f32 %v679_v32, %v583_v22  ;;  %v682_v51 = vmul.f32 0.6931472, %v2487_v29 }
  0xd5   :  { %v379_v59 = vadd.f32 %v2951_v28, %v357_v0  ;;  %v210_v16 = vmul.f32 %v2935_v18, %v172_v15  ;;  %v2489_v48 = vpop.eup %2488  ;;  %2250 = vmatprep.mubr.f32.mxu1 %v806_v2  ;;  %vm3134_vm3 = vcmp.lt.f32.partialorder %v695_v20, 0.0004427343  ;;  %v648_v35 = vmul.f32 1.442695, %v623_v30 }
  0xd6   :  { %v624_v40 = vsub.f32 0.0, %v608_v26  ;;  %2251 = vmatmul.mubr.f32.vlgmr.msra.gmra.mrb[0].mxu1 %v807_v45  ;;  %v688_v33 = vsel %vm3106_vm2, %v685_v6, %v682_v51  ;;  %v691_v63 = vmul.f32 0.6931472, %v2489_v48  ;;  %v702_v56 = vadd.f32 1.0, %v701_v24 }
  0xd7   :  { %v3129_v44 = vmul.f32 %v3030_v61, %v379_v59  ;;  %v358_v47 = vadd.f32 %v342_v27, %v210_v16  ;;  %v311_v21 = vpop.permute.xlu1 %310  ;;  %v3141_v49 = vpop.eup %2490  ;;  %v808_v37 = vadd.f32 %v688_v33, %v584_v34  ;;  %v704_v1 = vand.u32 2147483647, %v3088_v50 }
  0xd8   :  { %v179_v23 = vpop.permute.xlu0 %178  ;;  %v343_v43 = vmul.f32 %v2940_v19, %v311_v21  ;;  %v650_v58 = vmul.f32 1.442695, %v624_v40  ;;  %v3149_v4 = vpop.eup %2492  ;;  %v697_v54 = vsel %vm3134_vm3, %v694_v46, %v691_v63  ;;  %v707_v15 = vadd.f32 1.0, %v3118_v25 }
  0xd9   :  { %v609_v61 = vand.u32 2147483647, %v3129_v44  ;;  %v211_v22 = vmul.f32 %v2935_v18, %v179_v23  ;;  %v380_v55 = vadd.f32 %v2951_v28, %v358_v47  ;;  %2498 = vpow2.f32 %v648_v35  ;;  %2253 = vmatprep.mubr.f32.mxu1 %v808_v37 }
  0xda   :  { %v809_v20 = vadd.f32 %v697_v54, %v585_v39  ;;  %2500 = vlog2.f32 %v707_v15  ;;  %v710_v24 = vmul.f32 -0.5, %v3118_v25  ;;  %v586_v26 = vmax.f32 %v3004_v38, 0.0 }
  0xdb   :  { %v359_v0 = vadd.f32 %v343_v43, %v211_v22  ;;  %v625_v5 = vsub.f32 0.0, %v609_v61  ;;  %v3154_v7 = vmul.f32 %v537_v62, %v380_v55  ;;  %v318_v14 = vpop.permute.xlu1 %317  ;;  %2502 = vpow2.f32 %v650_v58  ;;  %v2495_v17 = vpop.eup %2494 }
  0xdc   :  { %v186_v6 = vpop.permute.xlu0 %185  ;;  %v344_v34 = vmul.f32 %v2940_v19, %v318_v14  ;;  %2254 = vmatmul.mubr.f32.gmra.mrb[2].mxu1 %v809_v20  ;;  %v703_v59 = vmul.f32 %v3088_v50, %v702_v56  ;;  %v716_v32 = vadd.f32 1.0, %v3141_v49  ;;  %v700_v42 = vmul.f32 0.6931472, %v2495_v17 }
  0xdd   :  { %v381_v60 = vadd.f32 %v2951_v28, %v359_v0  ;;  %v610_v41 = vand.u32 2147483647, %v3154_v7  ;;  %v212_v62 = vmul.f32 %v2935_v18, %v186_v6  ;;  %v652_v39 = vmul.f32 1.442695, %v625_v5  ;;  %v3177_v46 = vpop.eup %2496 }
  0xde   :  { %vm705_vm4 = vcmp.lt.f32.partialorder %v704_v1, 0.0004427343  ;;  %v711_v50 = vadd.f32 1.0, %v710_v24  ;;  %2504 = vlog2.f32 %v716_v32  ;;  %v719_v61 = vmul.f32 -0.5, %v3141_v49 }
  0xdf   :  { %v3169_v30 = vmul.f32 %v541_v8, %v381_v60  ;;  %v626_v27 = vsub.f32 0.0, %v610_v41  ;;  %v360_v29 = vadd.f32 %v344_v34, %v212_v62  ;;  %v325_v2 = vpop.permute.xlu1 %324  ;;  %v706_v21 = vsel %vm705_vm4, %v703_v59, %v700_v42 }
  0xe0   :  { %v193_v16 = vpop.permute.xlu0 %192  ;;  %v345_v45 = vmul.f32 %v2940_v19, %v325_v2  ;;  %2506 = vpow2.f32 %v652_v39  ;;  %v810_v52 = vadd.f32 %v706_v21, %v586_v26  ;;  %v713_v19 = vand.u32 2147483647, %v3118_v25 }
  0xe1   :  { %v611_v40 = vand.u32 2147483647, %v3169_v30  ;;  %v213_v8 = vmul.f32 %v2935_v18, %v193_v16  ;;  %v382_v38 = vadd.f32 %v2951_v28, %v360_v29  ;;  %v654_v48 = vmul.f32 1.442695, %v626_v27 }
  0xe2   :  { %2256 = vmatprep.mubr.f32.mxu1 %v810_v52  ;;  %v725_v22 = vadd.f32 1.0, %v3149_v4  ;;  %v712_v58 = vmul.f32 %v3118_v25, %v711_v50  ;;  %vm714_vm5 = vcmp.lt.f32.partialorder %v713_v19, 0.0004427343  ;;  %v720_v1 = vadd.f32 1.0, %v719_v61 }
  0xe3   :  { %v627_v47 = vsub.f32 0.0, %v611_v40  ;;  %v361_v51 = vadd.f32 %v345_v45, %v213_v8  ;;  %v3181_v23 = vmul.f32 %v3045_v9, %v382_v38  ;;  %v3188_v55 = vpop.eup %2498  ;;  %2508 = vpow2.f32 %v654_v48 }
  0xe4   :  { %v587_v9 = vmax.f32 %v3022_v53, 0.0  ;;  %v2501_v63 = vpop.eup %2500  ;;  %2510 = vlog2.f32 %v725_v22  ;;  %v722_v14 = vand.u32 2147483647, %v3141_v49  ;;  %v734_v53 = vadd.f32 1.0, %v3177_v46 }
  0xe5   :  { %v656_v35 = vmul.f32 1.442695, %v627_v47  ;;  %v383_v18 = vadd.f32 %v2951_v28, %v361_v51  ;;  %v612_v43 = vand.u32 2147483647, %v3181_v23  ;;  %v3195_v28 = vpop.eup %2502  ;;  %v709_v0 = vmul.f32 0.6931472, %v2501_v63 }
  0xe6   :  { %v743_v60 = vadd.f32 1.0, %v3188_v55  ;;  %v721_v41 = vmul.f32 %v3141_v49, %v720_v1  ;;  %v588_v24 = vmax.f32 %v3050_v13, 0.0  ;;  %vm723_vm6 = vcmp.lt.f32.partialorder %v722_v14, 0.0004427343 }
  0xe7   :  { %v3191_v33 = vmul.f32 %v3048_v10, %v383_v18  ;;  %v628_v56 = vsub.f32 0.0, %v612_v43  ;;  %2512 = vpow2.f32 %v656_v35  ;;  %v728_v10 = vmul.f32 -0.5, %v3149_v4 }
  0xe8   :  { %v715_v6 = vsel %vm714_vm5, %v712_v58, %v709_v0  ;;  %v2505_v15 = vpop.eup %2504  ;;  %v737_v17 = vmul.f32 -0.5, %v3177_v46  ;;  %v752_v39 = vadd.f32 1.0, %v3195_v28  ;;  %v731_v29 = vand.u32 2147483647, %v3149_v4 }
  0xe9   :  { %v613_v37 = vand.u32 2147483647, %v3191_v33  ;;  %v658_v5 = vmul.f32 1.442695, %v628_v56  ;;  %v811_v25 = vadd.f32 %v715_v6, %v587_v9  ;;  %v718_v20 = vmul.f32 0.6931472, %v2505_v15 }
  0xea   :  { %v3203_v62 = vpop.eup %2506  ;;  %v729_v26 = vadd.f32 1.0, %v728_v10  ;;  %v746_v49 = vmul.f32 -0.5, %v3188_v55  ;;  %v738_v42 = vadd.f32 1.0, %v737_v17  ;;  %v740_v8 = vand.u32 2147483647, %v3177_v46 }
  0xeb   :  { %v629_v54 = vsub.f32 0.0, %v613_v37  ;;  %2514 = vpow2.f32 %v658_v5  ;;  %2257 = vmatmul.mubr.f32.gmra.mrb[4].mxu1 %v811_v25  ;;  %v724_v59 = vsel %vm723_vm6, %v721_v41, %v718_v20  ;;  %v761_v16 = vadd.f32 1.0, %v3203_v62 }
  0xec   :  { %2516 = vlog2.f32 %v734_v53  ;;  %v812_v27 = vadd.f32 %v724_v59, %v588_v24  ;;  %v730_v32 = vmul.f32 %v3149_v4, %v729_v26  ;;  %v589_v38 = vmax.f32 %v3063_v36, 0.0 }
  0xed   :  { %v660_v34 = vmul.f32 1.442695, %v629_v54  ;;  %2518 = vlog2.f32 %v743_v60  ;;  %v3209_v2 = vpop.eup %2508  ;;  %vm732_vm7 = vcmp.lt.f32.partialorder %v731_v29, 0.0004427343  ;;  %v755_v50 = vmul.f32 -0.5, %v3195_v28 }
  0xee   :  { %v2511_v13 = vpop.eup %2510  ;;  %2259 = vmatprep.mubr.f32.mxu1 %v812_v27  ;;  %v770_v48 = vadd.f32 1.0, %v3209_v2  ;;  %v590_v21 = vmax.f32 %v3078_v11, 0.0  ;;  %v747_v51 = vadd.f32 1.0, %v746_v49  ;;  %v749_v4 = vand.u32 2147483647, %v3188_v55 }
  0xef   :  { %2520 = vpow2.f32 %v660_v34  ;;  %v727_v45 = vmul.f32 0.6931472, %v2511_v13  ;;  %v764_v35 = vmul.f32 -0.5, %v3203_v62  ;;  %v739_v61 = vmul.f32 %v3177_v46, %v738_v42 }
  0xf0   :  { %2522 = vlog2.f32 %v752_v39  ;;  %vm3227_vm8 = vcmp.lt.f32.partialorder %v740_v8, 0.0004427343  ;;  %v591_v11 = vmax.f32 %v3093_v31, 0.0  ;;  %v592_v22 = vmax.f32 %v3112_v57, 0.0 }
  0xf1   :  { %v3214_v40 = vpop.eup %2512  ;;  %2524 = vlog2.f32 %v761_v16  ;;  %v733_v47 = vsel %vm732_vm7, %v730_v32, %v727_v45  ;;  %v756_v56 = vadd.f32 1.0, %v755_v50  ;;  %v748_v0 = vmul.f32 %v3188_v55, %v747_v51 }
  0xf2   :  { %v813_v19 = vadd.f32 %v733_v47, %v589_v38  ;;  %2526 = vlog2.f32 %v770_v48  ;;  %v779_v18 = vadd.f32 1.0, %v3214_v40  ;;  %v758_v46 = vand.u32 2147483647, %v3195_v28 }
  0xf3   :  { %v773_v1 = vmul.f32 -0.5, %v3209_v2  ;;  %vm750_vm9 = vcmp.lt.f32.partialorder %v749_v4, 0.0004427343  ;;  %v765_v57 = vadd.f32 1.0, %v764_v35  ;;  %v767_v54 = vand.u32 2147483647, %v3203_v62 }
  0xf4   :  { %2260 = vmatmul.mubr.f32.gmra.mrb[6].mxu1 %v813_v19  ;;  %2528 = vlog2.f32 %v779_v18  ;;  %v782_v6 = vmul.f32 -0.5, %v3214_v40  ;;  %v757_v25 = vmul.f32 %v3195_v28, %v756_v56  ;;  %v593_v60 = vmax.f32 %v3129_v44, 0.0  ;;  %v1428_v56 = vld [vmem:[#allocation6] sm:$0xff] }
  0xf5   :  { %v3222_v52 = vpop.eup %2514  ;;  %vm759_vm10 = vcmp.lt.f32.partialorder %v758_v46, 0.0004427343  ;;  %v774_v20 = vadd.f32 1.0, %v773_v1  ;;  %v766_v17 = vmul.f32 %v3203_v62, %v765_v57  ;;  %v776_v39 = vand.u32 2147483647, %v3209_v2  ;;  %v1432_v1 = vld [vmem:[#allocation6 + $0x20] sm:$0xff] }
  0xf6   :  { %v2517_v36 = vpop.eup %2516  ;;  %v788_v58 = vadd.f32 1.0, %v3222_v52  ;;  %v791_v41 = vmul.f32 -0.5, %v3222_v52  ;;  %vm768_vm11 = vcmp.lt.f32.partialorder %v767_v54, 0.0004427343  ;;  %v783_v28 = vadd.f32 1.0, %v782_v6  ;;  %v1434_v57 = vld [vmem:[#allocation6 + $0x30] sm:$0xff] }
  0xf7   :  { %v2519_v9 = vpop.eup %2518  ;;  %v736_v63 = vmul.f32 0.6931472, %v2517_v36  ;;  %v785_v49 = vand.u32 2147483647, %v3214_v40  ;;  %v775_v32 = vmul.f32 %v3209_v2, %v774_v20  ;;  %v594_v8 = vmax.f32 %v3154_v7, 0.0  ;;  %v1438_v6 = vld [vmem:[#allocation6 + $0x50] sm:$0xff] }
  0xf8   :  { %v745_v37 = vmul.f32 0.6931472, %v2519_v9  ;;  %2530 = vlog2.f32 %v788_v58  ;;  %v792_v45 = vadd.f32 1.0, %v791_v41  ;;  %vm777_vm12 = vcmp.lt.f32.partialorder %v776_v39, 0.0004427343  ;;  %v1442_v20 = vld [vmem:[#allocation6 + $0x70] sm:$0xff] }
  0xf9   :  { %v3237_v5 = vpop.eup %2520  ;;  %v742_v31 = vsel %vm3227_vm8, %v739_v61, %v736_v63  ;;  %v794_v62 = vand.u32 2147483647, %v3222_v52  ;;  %v784_v47 = vmul.f32 %v3214_v40, %v783_v28  ;;  %v595_v4 = vmax.f32 %v3169_v30, 0.0  ;;  %v1443_v41 = vld [vmem:[#allocation6 + $0x78] sm:$0xff] }
  0xfa   :  { %v2523_v14 = vpop.eup %2522  ;;  %v814_v10 = vadd.f32 %v742_v31, %v590_v21  ;;  %v751_v53 = vsel %vm750_vm9, %v748_v0, %v745_v37  ;;  %v797_v24 = vadd.f32 1.0, %v3237_v5  ;;  %v800_v38 = vmul.f32 -0.5, %v3237_v5  ;;  %v1430_v37 = vld [vmem:[#allocation6 + $0x10] sm:$0xff]  ;;  %v1431_v0 = vld [vmem:[#allocation6 + $0x18] sm:$0xff]  ;;  %v1433_v31 = vld [vmem:[#allocation6 + $0x28] sm:$0xff] }
  0xfb   :  { %v815_v55 = vadd.f32 %v751_v53, %v591_v11  ;;  %v754_v15 = vmul.f32 0.6931472, %v2523_v14  ;;  %v2525_v34 = vpop.eup %2524  ;;  %vm786_vm13 = vcmp.lt.f32.partialorder %v785_v49, 0.0004427343  ;;  %v793_v35 = vmul.f32 %v3222_v52, %v792_v45  ;;  %v1435_v14 = vld [vmem:[#allocation6 + $0x38] sm:$0xff]  ;;  %v1437_v53 = vld [vmem:[#allocation6 + $0x48] sm:$0xff] }
  0xfc   :  { %2262 = vmatprep.mubr.f32.mxu1 %v814_v10  ;;  %v763_v59 = vmul.f32 0.6931472, %v2525_v34  ;;  %2532 = vlog2.f32 %v797_v24  ;;  %v2527_v44 = vpop.eup %2526  ;;  %v596_v18 = vmax.f32 %v3181_v23, 0.0  ;;  %vm795_vm14 = vcmp.lt.f32.partialorder %v794_v62, 0.0004427343  ;;  %v1429_v23 = vld [vmem:[#allocation6 + $0x8] sm:$0xff] }
  0xfd   :  { %2263 = vmatmul.mubr.f32.gmra.mrb[8].mxu1 %v815_v55  ;;  %v760_v26 = vsel %vm759_vm10, %v757_v25, %v754_v15  ;;  %v772_v13 = vmul.f32 0.6931472, %v2527_v44  ;;  %v801_v36 = vadd.f32 1.0, %v800_v38  ;;  %v803_v43 = vand.u32 2147483647, %v3237_v5  ;;  %v1436_v10 = vld [vmem:[#allocation6 + $0x40] sm:$0xff] }
  0xfe   :  { %v816_v27 = vadd.f32 %v760_v26, %v592_v22  ;;  %v769_v29 = vsel %vm768_vm11, %v766_v17, %v763_v59  ;;  %v2529_v42 = vpop.eup %2528  ;;  %v597_v9 = vmax.f32 %v3191_v33, 0.0  ;;  %v2397_v58 = vpack.c.bf16 %v1429_v23, %v1428_v56  ;;  %v1439_v55 = vld [vmem:[#allocation6 + $0x58] sm:$0xff]  ;;  %v1440_v25 = vld [vmem:[#allocation6 + $0x60] sm:$0xff] }
  0xff   :  { %v817_v16 = vadd.f32 %v769_v29, %v593_v60  ;;  %v778_v50 = vsel %vm777_vm12, %v775_v32, %v772_v13  ;;  %v781_v48 = vmul.f32 0.6931472, %v2529_v42  ;;  %v802_v30 = vmul.f32 %v3237_v5, %v801_v36  ;;  %v1441_v60 = vld [vmem:[#allocation6 + $0x68] sm:$0xff]  ;;  %v990_v26 = vld [vmem:[%s3857_s3] sm:$0xff] }
 0x100   :  { %2265 = vmatprep.mubr.f32.mxu1 %v816_v27  ;;  %v818_v51 = vadd.f32 %v778_v50, %v594_v8  ;;  %vm804_vm15 = vcmp.lt.f32.partialorder %v803_v43, 0.0004427343  ;;  %2398 = vmatprep.subr.bf16.mxu1 %v2397_v58  ;;  %v2401_v46 = vpack.c.bf16 %v1431_v0, %v1430_v37  ;;  %v2405_v5 = vpack.c.bf16 %v1433_v31, %v1432_v1  ;;  %v3270_v28 = vld [vmem:[%s3862_s8] ss:$0 sm:$0xff] }
 0x101   :  { %2266 = vmatmul.mubr.f32.gmra.mrb[10].mxu1 %v817_v16  ;;  %v787_v2 = vsel %vm786_vm13, %v784_v47, %v781_v48  ;;  %v2409_v33 = vpack.c.bf16 %v1435_v14, %v1434_v57  ;;  %v2413_v54 = vpack.c.bf16 %v1437_v53, %v1436_v10  ;;  %v2417_v15 = vpack.c.bf16 %v1439_v55, %v1438_v6 }
 0x102   :  { %v2531_v21 = vpop.eup %2530  ;;  %2268 = vmatprep.mubr.f32.mxu1 %v818_v51  ;;  %v819_v7 = vadd.f32 %v787_v2, %v595_v4  ;;  %2400 = vmatpush3.bf16.msra.mxu1 %v2397_v58  ;;  %v2421_v34 = vpack.c.bf16 %v1441_v60, %v1440_v25  ;;  %v2425_v24 = vpack.c.bf16 %v1443_v41, %v1442_v20 }
 0x103   :  { %v790_v19 = vmul.f32 0.6931472, %v2531_v21  ;;  %2402 = vmatprep.subr.bf16.mxu1 %v2401_v46  ;;  %v1001_v59 = vrot.slane %v990_v26, %v2926_v12  ;;  %v994_v38 = vcombine.high %v990_v26, %v990_v26 }
 0x105   :  { %v796_v61 = vsel %vm795_vm14, %v793_v35, %v790_v19  ;;  %2269 = vmatmul.mubr.f32.gmra.mrb[12].mxu1 %v819_v7  ;;  %v1009_v17 = vcombine.high %v1001_v59, %v1001_v59  ;;  %v1017_v27 = vrot.slane %v1001_v59, %v2926_v12 }
 0x106   :  { %v820_v40 = vadd.f32 %v796_v61, %v596_v18  ;;  %v2533_v11 = vpop.eup %2532  ;;  %2404 = vmatpush3.bf16.msra.mxu1 %v2401_v46  ;;  %v1008_v18 = vrot.slane %v994_v38, %v2926_v12 }
 0x107   :  { %v799_v22 = vmul.f32 0.6931472, %v2533_v11  ;;  %2406 = vmatprep.subr.bf16.mxu1 %v2405_v5  ;;  %v1031_v39 = vrot.slane %v1009_v17, %v2926_v12  ;;  %v1095_v49 = vrot.slane %v1017_v27, %v2844_v3  ;;  %v1039_v42 = vcombine.high %v1017_v27, %v1017_v27 }
 0x108   :  { %2271 = vmatprep.mubr.f32.mxu1 %v820_v40  ;;  %v1024_v0 = vrot.slane %v1008_v18, %v2926_v12 }
 0x109   :  { %v805_v52 = vsel %vm804_vm15, %v802_v30, %v799_v22  ;;  %v1099_v44 = vrot.slane %v1031_v39, %v2844_v3  ;;  %v1041_v32 = vcombine.high %v1031_v39, %v1031_v39  ;;  %v1103_v51 = vrot.slane %v1039_v42, %v2844_v3  ;;  %v991_v22 = vld [vmem:[%s3857_s3 + $0x8] sm:$0xff] }
 0x10a   :  { %v821_v63 = vadd.f32 %v805_v52, %v597_v9  ;;  %2408 = vmatpush3.bf16.msra.mxu1 %v2405_v5  ;;  %v1010_v9 = vcombine.high %v1008_v18, %v1008_v18  ;;  %v1050_v56 = vrot.slane %v991_v22, %v2926_v12  ;;  %v1043_v1 = vcombine.high %v991_v22, %v991_v22 }
 0x10b   :  { %2410 = vmatprep.subr.bf16.mxu1 %v2409_v33  ;;  %v1107_v48 = vrot.slane %v1041_v32, %v2844_v3  ;;  %v1111_v14 = vrot.slane %v1024_v0, %v2844_v3  ;;  %v1040_v60 = vcombine.high %v1024_v0, %v1024_v0 }
 0x10c   :  { %2272 = vmatmul.mubr.f32.gmra.mrb[14].mxu1 %v821_v63  ;;  %v1038_v37 = vrot.slane %v1010_v9, %v2926_v12  ;;  %v1058_v46 = vcombine.high %v1050_v56, %v1050_v56 }
 0x10e   :  { %2412 = vmatpush3.bf16.msra.mxu1 %v2409_v33  ;;  %v1115_v31 = vrot.slane %v1038_v37, %v2844_v3  ;;  %v1042_v33 = vcombine.high %v1038_v37, %v1038_v37  ;;  %v3305_v55 = vrot.slane %v1058_v46, %v2926_v12 }
 0x10f   :  { %2414 = vmatprep.subr.bf16.mxu1 %v2413_v54 }
 0x110   :  { %v1123_v39 = vrot.slane %v1042_v33, %v2844_v3 }
 0x112   :  { %2416 = vmatpush3.bf16.msra.mxu1 %v2413_v54 }
 0x113   :  { %2418 = vmatprep.subr.bf16.mxu1 %v2417_v15 }
 0x116   :  { %2420 = vmatpush3.bf16.msra.mxu1 %v2417_v15  ;;  %v1057_v15 = vrot.slane %v1043_v1, %v2926_v12 }
 0x117   :  { %2422 = vmatprep.subr.bf16.mxu1 %v2421_v34 }
 0x118   :  { %v1059_v27 = vcombine.high %v1057_v15, %v1057_v15 }
 0x11a   :  { %2424 = vmatpush3.bf16.msra.mxu1 %v2421_v34  ;;  %v3310_v34 = vrot.slane %v1050_v56, %v2926_v12 }
 0x11b   :  { %2426 = vmatprep.subr.bf16.mxu1 %v2425_v24 }
 0x11c   :  { %v1088_v59 = vcombine.high %v3310_v34, %v3310_v34 }
 0x11e   :  { %2428 = vmatpush3.bf16.msra.mxu1 %v2425_v24  ;;  %v1090_v24 = vcombine.high %v3305_v55, %v3305_v55 }
 0x120   :  { %v3334_v42 = vrot.slane %v1090_v24, %v2844_v3 }
 0x1a9   :  { %v2252_v29 = vpop.f32.mrb[0].mxu1 }
 0x1aa   :  { %v917_v16 = vadd.f32 %v2252_v29, %v3270_v28  ;;  %v911_v13 = vpop.f32.mrb[1].mxu1 }
 0x1ab   :  { %v912_v45 = vadd.f32 %v3270_v28, %v911_v13  ;;  %v1127_v13 = vrot.slane %v3310_v34, %v2844_v3 }
 0x1ac   :  { %v3276_v8 = vmul.f32 %v1099_v44, %v917_v16  ;;  %v1119_v16 = vrot.slane %v1040_v60, %v2844_v3 }
 0x1ad   :  { %v3278_v62 = vmul.f32 %v1095_v49, %v912_v45  ;;  %v1131_v45 = vrot.slane %v3305_v55, %v2844_v3 }
 0x1ae   :  { %v1205_v50 = vand.u32 2147483647, %v3276_v8 }
 0x1af   :  { %v1204_v47 = vand.u32 2147483647, %v3278_v62  ;;  %v2255_v21 = vpop.f32.mrb[2].mxu1 }
 0x1b0   :  { %v1221_v4 = vsub.f32 0.0, %v1205_v50  ;;  %v927_v2 = vadd.f32 %v2255_v21, %v3270_v28  ;;  %v921_v19 = vpop.f32.mrb[3].mxu1  ;;  %v3342_v21 = vrot.slane %v1057_v15, %v2926_v12 }
 0x1b1   :  { %v1220_v35 = vsub.f32 0.0, %v1204_v47  ;;  %v922_v7 = vadd.f32 %v3270_v28, %v921_v19  ;;  %v3339_v47 = vrot.slane %v1088_v59, %v2844_v3  ;;  %v3346_v19 = vrot.slane %v1059_v27, %v2926_v12 }
 0x1b2   :  { %v1238_v36 = vmul.f32 1.442695, %v1221_v4  ;;  %v3287_v61 = vmul.f32 %v1107_v48, %v927_v2 }
 0x1b3   :  { %v1236_v43 = vmul.f32 1.442695, %v1220_v35  ;;  %v3289_v40 = vmul.f32 %v1103_v51, %v922_v7 }
 0x1b4   :  { %2534 = vpow2.f32 %v1238_v36  ;;  %v1207_v11 = vand.u32 2147483647, %v3287_v61 }
 0x1b5   :  { %2536 = vpow2.f32 %v1236_v43  ;;  %v1206_v30 = vand.u32 2147483647, %v3289_v40  ;;  %v1189_v43 = vmax.f32 %v3276_v8, 0.0  ;;  %v1191_v8 = vmax.f32 %v3287_v61, 0.0 }
 0x1b6   :  { %v1223_v52 = vsub.f32 0.0, %v1207_v11  ;;  %v1188_v11 = vmax.f32 %v3278_v62, 0.0 }
 0x1b7   :  { %v1222_v63 = vsub.f32 0.0, %v1206_v30 }
 0x1b8   :  { %v1242_v23 = vmul.f32 1.442695, %v1223_v52 }
 0x1b9   :  { %v1240_v58 = vmul.f32 1.442695, %v1222_v63 }
 0x1ba   :  { %2538 = vpow2.f32 %v1242_v23 }
 0x1bb   :  { %2540 = vpow2.f32 %v1240_v58 }
 0x1be   :  { %v2535_v57 = vpop.eup %2534  ;;  %v2258_v5 = vpop.f32.mrb[4].mxu1 }
 0x1bf   :  { %v3301_v10 = vpop.eup %2536  ;;  %v1277_v53 = vadd.f32 1.0, %v2535_v57  ;;  %v937_v54 = vadd.f32 %v2258_v5, %v3270_v28  ;;  %v931_v6 = vpop.f32.mrb[5].mxu1  ;;  %v1280_v29 = vmul.f32 -0.5, %v2535_v57  ;;  %v1283_v4 = vand.u32 2147483647, %v2535_v57 }
 0x1c0   :  { %v932_v25 = vadd.f32 %v3270_v28, %v931_v6  ;;  %v1268_v20 = vadd.f32 1.0, %v3301_v10  ;;  %v1271_v38 = vmul.f32 -0.5, %v3301_v10  ;;  %v1274_v36 = vand.u32 2147483647, %v3301_v10 }
 0x1c1   :  { %2542 = vlog2.f32 %v1277_v53  ;;  %v3313_v41 = vmul.f32 %v1115_v31, %v937_v54  ;;  %v1281_v35 = vadd.f32 1.0, %v1280_v29  ;;  %vm3355_vm0 = vcmp.lt.f32.partialorder %v1283_v4, 0.0004427343 }
 0x1c2   :  { %v3317_v26 = vmul.f32 %v1111_v14, %v932_v25  ;;  %2544 = vlog2.f32 %v1268_v20  ;;  %v1272_v9 = vadd.f32 1.0, %v1271_v38  ;;  %vm3364_vm1 = vcmp.lt.f32.partialorder %v1274_v36, 0.0004427343 }
 0x1c3   :  { %v1209_v17 = vand.u32 2147483647, %v3313_v41  ;;  %v1282_v1 = vmul.f32 %v2535_v57, %v1281_v35 }
 0x1c4   :  { %v3323_v44 = vpop.eup %2538  ;;  %v1208_v49 = vand.u32 2147483647, %v3317_v26  ;;  %v1273_v53 = vmul.f32 %v3301_v10, %v1272_v9 }
 0x1c5   :  { %v3329_v32 = vpop.eup %2540  ;;  %v1295_v50 = vadd.f32 1.0, %v3323_v44  ;;  %v1225_v2 = vsub.f32 0.0, %v1209_v17  ;;  %v1298_v56 = vmul.f32 -0.5, %v3323_v44  ;;  %v1301_v54 = vand.u32 2147483647, %v3323_v44 }
 0x1c6   :  { %v1224_v48 = vsub.f32 0.0, %v1208_v49  ;;  %v1286_v51 = vadd.f32 1.0, %v3329_v32  ;;  %v1289_v63 = vmul.f32 -0.5, %v3329_v32  ;;  %v1190_v49 = vmax.f32 %v3289_v40, 0.0 }
 0x1c7   :  { %2546 = vlog2.f32 %v1295_v50  ;;  %v2261_v18 = vpop.f32.mrb[6].mxu1  ;;  %v1246_v37 = vmul.f32 1.442695, %v1225_v2  ;;  %v1299_v15 = vadd.f32 1.0, %v1298_v56  ;;  %vm3387_vm2 = vcmp.lt.f32.partialorder %v1301_v54, 0.0004427343 }
 0x1c8   :  { %v1244_v7 = vmul.f32 1.442695, %v1224_v48  ;;  %2548 = vlog2.f32 %v1286_v51  ;;  %v947_v22 = vadd.f32 %v2261_v18, %v3270_v28  ;;  %v941_v30 = vpop.f32.mrb[7].mxu1  ;;  %v1290_v57 = vadd.f32 1.0, %v1289_v63 }
 0x1c9   :  { %v942_v52 = vadd.f32 %v3270_v28, %v941_v30  ;;  %v1300_v18 = vmul.f32 %v3323_v44, %v1299_v15  ;;  %v1147_v56 = vrot.slane %v3346_v19, %v2844_v3 }
 0x1ca   :  { %2550 = vpow2.f32 %v1244_v7  ;;  %v3360_v62 = vmul.f32 %v1123_v39, %v947_v22  ;;  %v1292_v39 = vand.u32 2147483647, %v3329_v32 }
 0x1cb   :  { %v2543_v23 = vpop.eup %2542  ;;  %v3362_v31 = vmul.f32 %v1119_v16, %v942_v52  ;;  %2552 = vpow2.f32 %v1246_v37 }
 0x1cc   :  { %v2545_v0 = vpop.eup %2544  ;;  %v1279_v46 = vmul.f32 0.6931472, %v2543_v23  ;;  %v1211_v14 = vand.u32 2147483647, %v3360_v62  ;;  %vm1293_vm3 = vcmp.lt.f32.partialorder %v1292_v39, 0.0004427343 }
 0x1cd   :  { %v1270_v33 = vmul.f32 0.6931472, %v2545_v0  ;;  %v1210_v6 = vand.u32 2147483647, %v3362_v31 }
 0x1ce   :  { %v1285_v61 = vsel %vm3355_vm0, %v1282_v1, %v1279_v46  ;;  %v1227_v25 = vsub.f32 0.0, %v1211_v14  ;;  %v1143_v1 = vrot.slane %v3342_v21, %v2844_v3  ;;  %vm2740_vm0 = vmmov 0  }
 0x1cf   :  { %v1276_v24 = vsel %vm3364_vm1, %v1273_v53, %v1270_v33  ;;  %v1226_v59 = vsub.f32 0.0, %v1210_v6  ;;  %v1413_v29 = vadd.f32 %v1285_v61, %v1189_v43 }
 0x1d0   :  { %v2264_v55 = vpop.f32.mrb[8].mxu1  ;;  %v1412_v17 = vadd.f32 %v1276_v24, %v1188_v11  ;;  %v1250_v16 = vmul.f32 1.442695, %v1227_v25 }
 0x1d1   :  { %v957_v60 = vadd.f32 %v2264_v55, %v3270_v28  ;;  %v951_v20 = vpop.f32.mrb[9].mxu1  ;;  %v2547_v27 = vpop.eup %2546  ;;  %v1248_v48 = vmul.f32 1.442695, %v1226_v59  ;;  %v1089_v55 = vcombine.high %v3342_v21, %v3342_v21 }
 0x1d2   :  { %v952_v10 = vadd.f32 %v3270_v28, %v951_v20  ;;  %v2549_v50 = vpop.eup %2548  ;;  %2306 = vmatprep.mubr.f32.mxu1 %v1412_v17  ;;  %v1297_v4 = vmul.f32 0.6931472, %v2547_v27 }
 0x1d3   :  { %v3380_v38 = vmul.f32 %v1131_v45, %v957_v60  ;;  %2307 = vmatmul.mubr.f32.vlgmr.msra.gmra.mrb[16].mxu1 %v1413_v29  ;;  %v1288_v40 = vmul.f32 0.6931472, %v2549_v50  ;;  %v1291_v45 = vmul.f32 %v3329_v32, %v1290_v57  ;;  %2554 = vpow2.f32 %v1248_v48 }
 0x1d4   :  { %v3385_v51 = vmul.f32 %v1127_v13, %v952_v10  ;;  %v2267_v7 = vpop.f32.mrb[10].mxu1  ;;  %v3394_v36 = vpop.eup %2550  ;;  %2556 = vpow2.f32 %v1250_v16  ;;  %v1303_v30 = vsel %vm3387_vm2, %v1300_v18, %v1297_v4  ;;  %v1151_v27 = vrot.slane %v1089_v55, %v2844_v3 }
 0x1d5   :  { %v1213_v35 = vand.u32 2147483647, %v3380_v38  ;;  %v967_v13 = vadd.f32 %v2267_v7, %v3270_v28  ;;  %v961_v43 = vpop.f32.mrb[11].mxu1  ;;  %v1294_v22 = vsel %vm1293_vm3, %v1291_v45, %v1288_v40  ;;  %v1415_v23 = vadd.f32 %v1303_v30, %v1191_v8 }
 0x1d6   :  { %v1212_v34 = vand.u32 2147483647, %v3385_v51  ;;  %v962_v11 = vadd.f32 %v3270_v28, %v961_v43  ;;  %v1414_v52 = vadd.f32 %v1294_v22, %v1190_v49  ;;  %v1304_v58 = vadd.f32 1.0, %v3394_v36 }
 0x1d7   :  { %v1229_v9 = vsub.f32 0.0, %v1213_v35  ;;  %v3402_v44 = vmul.f32 %v3334_v42, %v967_v13  ;;  %v3413_v42 = vpop.eup %2552  ;;  %v1091_v8 = vcombine.high %v3346_v19, %v3346_v19  ;;  %v1307_v15 = vmul.f32 -0.5, %v3394_v36 }
 0x1d8   :  { %v1228_v32 = vsub.f32 0.0, %v1212_v34  ;;  %v3405_v63 = vmul.f32 %v3339_v47, %v962_v11  ;;  %v2270_v46 = vpop.f32.mrb[12].mxu1  ;;  %2309 = vmatprep.mubr.f32.mxu1 %v1414_v52  ;;  %v1313_v25 = vadd.f32 1.0, %v3413_v42  ;;  %v1316_v2 = vmul.f32 -0.5, %v3413_v42 }
 0x1d9   :  { %v1215_v0 = vand.u32 2147483647, %v3402_v44  ;;  %v977_v47 = vadd.f32 %v2270_v46, %v3270_v28  ;;  %v971_v14 = vpop.f32.mrb[13].mxu1  ;;  %2310 = vmatmul.mubr.f32.gmra.mrb[18].mxu1 %v1415_v23  ;;  %v1254_v33 = vmul.f32 1.442695, %v1229_v9  ;;  %v1155_v10 = vrot.slane %v1091_v8, %v2844_v3 }
 0x1da   :  { %v1252_v37 = vmul.f32 1.442695, %v1228_v32  ;;  %v1214_v5 = vand.u32 2147483647, %v3405_v63  ;;  %v972_v54 = vadd.f32 %v3270_v28, %v971_v14  ;;  %v1308_v4 = vadd.f32 1.0, %v1307_v15 }
 0x1db   :  { %v1231_v53 = vsub.f32 0.0, %v1215_v0  ;;  %v3420_v6 = vmul.f32 %v1147_v56, %v977_v47  ;;  %v1310_v18 = vand.u32 2147483647, %v3394_v36  ;;  %v1192_v22 = vmax.f32 %v3317_v26, 0.0 }
 0x1dc   :  { %2558 = vpow2.f32 %v1252_v37  ;;  %v1230_v61 = vsub.f32 0.0, %v1214_v5  ;;  %v3424_v57 = vmul.f32 %v1143_v1, %v972_v54  ;;  %v1309_v9 = vmul.f32 %v3394_v36, %v1308_v4 }
 0x1dd   :  { %2560 = vlog2.f32 %v1304_v58  ;;  %v1258_v60 = vmul.f32 1.442695, %v1231_v53  ;;  %v1217_v20 = vand.u32 2147483647, %v3420_v6  ;;  %v3429_v24 = vpop.eup %2554  ;;  %v1317_v56 = vadd.f32 1.0, %v1316_v2 }
 0x1de   :  { %v1256_v19 = vmul.f32 1.442695, %v1230_v61  ;;  %2562 = vpow2.f32 %v1254_v33  ;;  %v1216_v59 = vand.u32 2147483647, %v3424_v57  ;;  %v3433_v17 = vpop.eup %2556  ;;  %v1322_v50 = vadd.f32 1.0, %v3429_v24 }
 0x1df   :  { %v1233_v21 = vsub.f32 0.0, %v1217_v20  ;;  %v2273_v39 = vpop.f32.mrb[14].mxu1  ;;  %v1331_v34 = vadd.f32 1.0, %v3433_v17  ;;  %vm1311_vm4 = vcmp.lt.f32.partialorder %v1310_v18, 0.0004427343  ;;  %v1334_v58 = vmul.f32 -0.5, %v3433_v17 }
 0x1e0   :  { %2564 = vpow2.f32 %v1256_v19  ;;  %v1232_v29 = vsub.f32 0.0, %v1216_v59  ;;  %v987_v49 = vadd.f32 %v2273_v39, %v3270_v28  ;;  %v981_v16 = vpop.f32.mrb[15].mxu1  ;;  %v1319_v26 = vand.u32 2147483647, %v3413_v42 }
 0x1e1   :  { %2566 = vlog2.f32 %v1313_v25  ;;  %v982_v48 = vadd.f32 %v3270_v28, %v981_v16  ;;  %v1262_v35 = vmul.f32 1.442695, %v1233_v21  ;;  %v1325_v28 = vmul.f32 -0.5, %v3429_v24 }
 0x1e2   :  { %2568 = vpow2.f32 %v1258_v60  ;;  %v1260_v7 = vmul.f32 1.442695, %v1232_v29  ;;  %v3440_v40 = vmul.f32 %v1155_v10, %v987_v49  ;;  %v1193_v36 = vmax.f32 %v3313_v41, 0.0 }
 0x1e3   :  { %2570 = vlog2.f32 %v1322_v50  ;;  %v3442_v45 = vmul.f32 %v1151_v27, %v982_v48  ;;  %v1326_v5 = vadd.f32 1.0, %v1325_v28  ;;  %v1195_v53 = vmax.f32 %v3360_v62, 0.0 }
 0x1e4   :  { %2572 = vpow2.f32 %v1260_v7  ;;  %v1219_v43 = vand.u32 2147483647, %v3440_v40  ;;  %v1318_v54 = vmul.f32 %v3413_v42, %v1317_v56  ;;  %v1328_v61 = vand.u32 2147483647, %v3429_v24 }
 0x1e5   :  { %v1218_v30 = vand.u32 2147483647, %v3442_v45  ;;  %2574 = vlog2.f32 %v1331_v34  ;;  %v1335_v25 = vadd.f32 1.0, %v1334_v58  ;;  %vm1320_vm5 = vcmp.lt.f32.partialorder %v1319_v26, 0.0004427343 }
 0x1e6   :  { %v3446_v13 = vpop.eup %2558  ;;  %2576 = vpow2.f32 %v1262_v35  ;;  %v1235_v32 = vsub.f32 0.0, %v1219_v43  ;;  %v1327_v19 = vmul.f32 %v3429_v24, %v1326_v5  ;;  %v1337_v10 = vand.u32 2147483647, %v3433_v17 }
 0x1e7   :  { %v2561_v11 = vpop.eup %2560  ;;  %v1234_v23 = vsub.f32 0.0, %v1218_v30  ;;  %v1340_v37 = vadd.f32 1.0, %v3446_v13  ;;  %v1343_v20 = vmul.f32 -0.5, %v3446_v13  ;;  %v1194_v39 = vmax.f32 %v3362_v31, 0.0 }
 0x1e8   :  { %v1306_v52 = vmul.f32 0.6931472, %v2561_v11  ;;  %v3455_v0 = vpop.eup %2562  ;;  %v1266_v46 = vmul.f32 1.442695, %v1235_v32  ;;  %vm1329_vm6 = vcmp.lt.f32.partialorder %v1328_v61, 0.0004427343  ;;  %v1336_v24 = vmul.f32 %v3433_v17, %v1335_v25 }
 0x1e9   :  { %v1264_v14 = vmul.f32 1.442695, %v1234_v23  ;;  %2578 = vlog2.f32 %v1340_v37  ;;  %v1349_v60 = vadd.f32 1.0, %v3455_v0  ;;  %v1346_v16 = vand.u32 2147483647, %v3446_v13 }
 0x1ea   :  { %v1312_v1 = vsel %vm1311_vm4, %v1309_v9, %v1306_v52  ;;  %v3458_v47 = vpop.eup %2564  ;;  %2580 = vpow2.f32 %v1266_v46  ;;  %v1344_v35 = vadd.f32 1.0, %v1343_v20  ;;  %v1352_v7 = vmul.f32 -0.5, %v3455_v0 }
 0x1eb   :  { %v1416_v8 = vadd.f32 %v1312_v1, %v1192_v22  ;;  %v2567_v33 = vpop.eup %2566  ;;  %2582 = vpow2.f32 %v1264_v14  ;;  %v1358_v62 = vadd.f32 1.0, %v3458_v47  ;;  %vm1338_vm7 = vcmp.lt.f32.partialorder %v1337_v10, 0.0004427343 }
 0x1ec   :  { %v3464_v55 = vpop.eup %2568  ;;  %v1315_v15 = vmul.f32 0.6931472, %v2567_v33  ;;  %2584 = vlog2.f32 %v1349_v60  ;;  %v1361_v31 = vmul.f32 -0.5, %v3458_v47  ;;  %v1197_v17 = vmax.f32 %v3380_v38, 0.0 }
 0x1ed   :  { %2312 = vmatprep.mubr.f32.mxu1 %v1416_v8  ;;  %v2571_v41 = vpop.eup %2570  ;;  %2586 = vlog2.f32 %v1358_v62  ;;  %v1367_v50 = vadd.f32 1.0, %v3464_v55  ;;  %v1355_v43 = vand.u32 2147483647, %v3455_v0  ;;  %v1370_v22 = vmul.f32 -0.5, %v3464_v55 }
 0x1ee   :  { %v1321_v59 = vsel %vm1320_vm5, %v1318_v54, %v1315_v15  ;;  %v1324_v42 = vmul.f32 0.6931472, %v2571_v41  ;;  %v3471_v21 = vpop.eup %2572  ;;  %v1196_v32 = vmax.f32 %v3385_v51, 0.0  ;;  %v1345_v56 = vmul.f32 %v3446_v13, %v1344_v35 }
 0x1ef   :  { %v1417_v27 = vadd.f32 %v1321_v59, %v1193_v36  ;;  %v2575_v29 = vpop.eup %2574  ;;  %2588 = vlog2.f32 %v1367_v50  ;;  %v1376_v18 = vadd.f32 1.0, %v3471_v21  ;;  %v1353_v23 = vadd.f32 1.0, %v1352_v7 }
 0x1f0   :  { %v1330_v49 = vsel %vm1329_vm6, %v1327_v19, %v1324_v42  ;;  %v3477_v48 = vpop.eup %2576  ;;  %v1333_v2 = vmul.f32 0.6931472, %v2575_v29  ;;  %vm1347_vm8 = vcmp.lt.f32.partialorder %v1346_v16, 0.0004427343  ;;  %v1362_v58 = vadd.f32 1.0, %v1361_v31 }
 0x1f1   :  { %2313 = vmatmul.mubr.f32.gmra.mrb[20].mxu1 %v1417_v27  ;;  %v1418_v4 = vadd.f32 %v1330_v49, %v1194_v39  ;;  %2590 = vlog2.f32 %v1376_v18  ;;  %v1385_v30 = vadd.f32 1.0, %v3477_v48  ;;  %v1364_v1 = vand.u32 2147483647, %v3458_v47 }
 0x1f2   :  { %v1339_v34 = vsel %vm1338_vm7, %v1336_v24, %v1333_v2  ;;  %v1379_v26 = vmul.f32 -0.5, %v3471_v21  ;;  %v1198_v36 = vmax.f32 %v3405_v63, 0.0  ;;  %vm3497_vm9 = vcmp.lt.f32.partialorder %v1355_v43, 0.0004427343 }
 0x1f3   :  { %2315 = vmatprep.mubr.f32.mxu1 %v1418_v4  ;;  %v2579_v28 = vpop.eup %2578  ;;  %v1419_v11 = vadd.f32 %v1339_v34, %v1195_v53  ;;  %2592 = vlog2.f32 %v1385_v30  ;;  %v1371_v8 = vadd.f32 1.0, %v1370_v22  ;;  %v1354_v54 = vmul.f32 %v3455_v0, %v1353_v23 }
 0x1f4   :  { %v3486_v9 = vpop.eup %2580  ;;  %v1342_v52 = vmul.f32 0.6931472, %v2579_v28  ;;  %v1388_v61 = vmul.f32 -0.5, %v3477_v48  ;;  %v1363_v25 = vmul.f32 %v3458_v47, %v1362_v58  ;;  %v1373_v60 = vand.u32 2147483647, %v3464_v55 }
 0x1f5   :  { %v3490_v38 = vpop.eup %2582  ;;  %2316 = vmatmul.mubr.f32.gmra.mrb[22].mxu1 %v1419_v11  ;;  %v1403_v37 = vadd.f32 1.0, %v3486_v9  ;;  %vm1365_vm10 = vcmp.lt.f32.partialorder %v1364_v1, 0.0004427343  ;;  %v1380_v41 = vadd.f32 1.0, %v1379_v26  ;;  %v1382_v19 = vand.u32 2147483647, %v3471_v21 }
 0x1f6   :  { %v1348_v46 = vsel %vm1347_vm8, %v1345_v56, %v1342_v52  ;;  %v1394_v5 = vadd.f32 1.0, %v3490_v38  ;;  %v2585_v51 = vpop.eup %2584  ;;  %v1372_v59 = vmul.f32 %v3464_v55, %v1371_v8  ;;  %v1397_v42 = vmul.f32 -0.5, %v3490_v38 }
 0x1f7   :  { %v1420_v13 = vadd.f32 %v1348_v46, %v1196_v32  ;;  %v2587_v33 = vpop.eup %2586  ;;  %v1351_v53 = vmul.f32 0.6931472, %v2585_v51  ;;  %v1389_v47 = vadd.f32 1.0, %v1388_v61  ;;  %v1406_v27 = vmul.f32 -0.5, %v3486_v9 }
 0x1f8   :  { %2594 = vlog2.f32 %v1394_v5  ;;  %v1360_v15 = vmul.f32 0.6931472, %v2587_v33  ;;  %v1199_v49 = vmax.f32 %v3402_v44, 0.0  ;;  %vm1374_vm11 = vcmp.lt.f32.partialorder %v1373_v60, 0.0004427343 }
 0x1f9   :  { %2318 = vmatprep.mubr.f32.mxu1 %v1420_v13  ;;  %2596 = vlog2.f32 %v1403_v37  ;;  %v1357_v63 = vsel %vm3497_vm9, %v1354_v54, %v1351_v53  ;;  %v2589_v20 = vpop.eup %2588  ;;  %v1391_v24 = vand.u32 2147483647, %v3477_v48  ;;  %v1200_v16 = vmax.f32 %v3424_v57, 0.0  ;;  %v2035_v33 = vld [vmem:[#allocation2] sm:$0x1] }
 0x1fa   :  { %v1421_v62 = vadd.f32 %v1357_v63, %v1197_v17  ;;  %v1366_v0 = vsel %vm1365_vm10, %v1363_v25, %v1360_v15  ;;  %v1369_v39 = vmul.f32 0.6931472, %v2589_v20  ;;  %v1381_v55 = vmul.f32 %v3471_v21, %v1380_v41 }
 0x1fb   :  { %v1422_v10 = vadd.f32 %v1366_v0, %v1198_v36  ;;  %v2591_v29 = vpop.eup %2590  ;;  %vm1383_vm12 = vcmp.lt.f32.partialorder %v1382_v19, 0.0004427343  ;;  %v1398_v7 = vadd.f32 1.0, %v1397_v42  ;;  %v1400_v31 = vand.u32 2147483647, %v3490_v38 }
 0x1fc   :  { %2319 = vmatmul.mubr.f32.gmra.mrb[24].mxu1 %v1421_v62  ;;  %v1375_v50 = vsel %vm1374_vm11, %v1372_v59, %v1369_v39  ;;  %v1378_v4 = vmul.f32 0.6931472, %v2591_v29  ;;  %v1390_v44 = vmul.f32 %v3477_v48, %v1389_v47  ;;  %v1407_v34 = vadd.f32 1.0, %v1406_v27  ;;  %v3533_v36 = vld [vmem:[%s3864_s10] ss:$0 sm:$0xff] }
 0x1fd   :  { %2321 = vmatprep.mubr.f32.mxu1 %v1422_v10  ;;  %v2593_v2 = vpop.eup %2592  ;;  %v1423_v35 = vadd.f32 %v1375_v50, %v1199_v49  ;;  %v1201_v43 = vmax.f32 %v3420_v6, 0.0  ;;  %vm1392_vm13 = vcmp.lt.f32.partialorder %v1391_v24, 0.0004427343  ;;  %v1409_v28 = vand.u32 2147483647, %v3486_v9 }
 0x1fe   :  { %v1384_v18 = vsel %vm1383_vm12, %v1381_v55, %v1378_v4  ;;  %v1387_v17 = vmul.f32 0.6931472, %v2593_v2  ;;  %v1399_v52 = vmul.f32 %v3490_v38, %v1398_v7  ;;  %v1202_v56 = vmax.f32 %v3442_v45, 0.0  ;;  %v1596_v45 = vld [vmem:[%s3858_s4] sm:$0xff] }
 0x1ff   :  { %v1424_v57 = vadd.f32 %v1384_v18, %v1200_v16  ;;  %vm1401_vm14 = vcmp.lt.f32.partialorder %v1400_v31, 0.0004427343  ;;  %v1408_v23 = vmul.f32 %v3486_v9, %v1407_v34  ;;  %v1203_v6 = vmax.f32 %v3440_v40, 0.0  ;;  %v1597_v31 = vld [vmem:[%s3858_s4 + $0x8] sm:$0xff] }
 0x200   :  { %2322 = vmatmul.mubr.f32.gmra.mrb[26].mxu1 %v1423_v35  ;;  %v1393_v21 = vsel %vm1392_vm13, %v1390_v44, %v1387_v17  ;;  %vm1410_vm15 = vcmp.lt.f32.partialorder %v1409_v28, 0.0004427343  ;;  %v2739_v26 = vmov 0.0|0.0   ;;  %v1607_v38 = vrot.slane %v1596_v45, %v2926_v12 }
 0x201   :  { %2324 = vmatprep.mubr.f32.mxu1 %v1424_v57  ;;  %v1425_v30 = vadd.f32 %v1393_v21, %v1201_v43  ;;  %2429 = vmatprep.subr.bf16.mxu0 %v2739_v26  ;;  %v2741_v40 = vmov 0.0   ;;  %v2742_v15 = vmov 0   ;;  %v1600_v50 = vcombine.high %v1596_v45, %v1596_v45 }
 0x202   :  { %v2595_v11 = vpop.eup %2594  ;;  %v1615_v9 = vcombine.high %v1607_v38, %v1607_v38  ;;  %2362 = vmatprep.mubr.msk.f32.mxu0 %vm2740_vm0, %v2741_v40  ;;  %v1623_v51 = vrot.slane %v1607_v38, %v2926_v12  ;;  %2463 = vset.pattern.permute.xlu0 %v2742_v15  ;;  %v1656_v44 = vrot.slane %v1597_v31, %v2926_v12 }
 0x203   :  { %v2597_v22 = vpop.eup %2596  ;;  %v1396_v32 = vmul.f32 0.6931472, %v2595_v11  ;;  %2038 = vperm.xlu0 %2463, %v2035_v33   ;;  %v1614_v7 = vrot.slane %v1600_v50, %v2926_v12 }
 0x204   :  { %v1405_v48 = vmul.f32 0.6931472, %v2597_v22  ;;  %2325 = vmatmul.mubr.f32.gmra.mrb[28].mxu1 %v1425_v30  ;;  %v1637_v5 = vrot.slane %v1615_v9, %v2926_v12  ;;  %v1701_v8 = vrot.slane %v1623_v51, %v2844_v3  ;;  %v1645_v60 = vcombine.high %v1623_v51, %v1623_v51 }
 0x205   :  { %v1402_v58 = vsel %vm1401_vm14, %v1399_v52, %v1396_v32  ;;  %v1616_v34 = vcombine.high %v1614_v7, %v1614_v7  ;;  %v1664_v57 = vcombine.high %v1656_v44, %v1656_v44  ;;  %v1630_v21 = vrot.slane %v1614_v7, %v2926_v12 }
 0x206   :  { %v1426_v37 = vadd.f32 %v1402_v58, %v1202_v56  ;;  %v1411_v46 = vsel %vm1410_vm15, %v1408_v23, %v1405_v48  ;;  %v1705_v13 = vrot.slane %v1637_v5, %v2844_v3  ;;  %v1647_v61 = vcombine.high %v1637_v5, %v1637_v5 }
 0x207   :  { %v1427_v1 = vadd.f32 %v1411_v46, %v1203_v6  ;;  %v1709_v59 = vrot.slane %v1645_v60, %v2844_v3  ;;  %v1644_v11 = vrot.slane %v1616_v34, %v2926_v12  ;;  %v1646_v52 = vcombine.high %v1630_v21, %v1630_v21 }
 0x208   :  { %2327 = vmatprep.mubr.f32.mxu1 %v1426_v37  ;;  %v1713_v20 = vrot.slane %v1647_v61, %v2844_v3  ;;  %v1649_v56 = vcombine.high %v1597_v31, %v1597_v31  ;;  %v3563_v48 = vrot.slane %v1664_v57, %v2926_v12  ;;  %v1717_v37 = vrot.slane %v1630_v21, %v2844_v3 }
 0x209   :  { %2328 = vmatmul.mubr.f32.gmra.mrb[30].mxu1 %v1427_v1  ;;  %v1648_v32 = vcombine.high %v1644_v11, %v1644_v11  ;;  %v1721_v58 = vrot.slane %v1644_v11, %v2844_v3  ;;  %v3570_v46 = vrot.slane %v1656_v44, %v2926_v12  ;;  %v1725_v9 = vrot.slane %v1646_v52, %v2844_v3 }
 0x20a   :  { %v3577_v40 = vrot.slane %v1649_v56, %v2926_v12 }
 0x20b   :  { %v1729_v38 = vrot.slane %v1648_v32, %v2844_v3  ;;  %v1733_v60 = vrot.slane %v3570_v46, %v2844_v3 }
 0x2a6   :  { %v2308_v14 = vpop.f32.mrb[16].mxu1 }
 0x2a7   :  { %v1523_v53 = vadd.f32 %v2308_v14, %v3533_v36  ;;  %v1517_v54 = vpop.f32.mrb[17].mxu1  ;;  %v1696_v14 = vcombine.high %v3563_v48, %v3563_v48 }
 0x2a8   :  { %v1518_v25 = vadd.f32 %v3533_v36, %v1517_v54 }
 0x2a9   :  { %v3539_v63 = vmul.f32 %v1705_v13, %v1523_v53  ;;  %v1737_v13 = vrot.slane %v3563_v48, %v2844_v3 }
 0x2aa   :  { %v3541_v41 = vmul.f32 %v1701_v8, %v1518_v25 }
 0x2ab   :  { %v1811_v19 = vand.u32 2147483647, %v3539_v63 }
 0x2ac   :  { %v1810_v62 = vand.u32 2147483647, %v3541_v41  ;;  %v2311_v0 = vpop.f32.mrb[18].mxu1 }
 0x2ad   :  { %v1827_v42 = vsub.f32 0.0, %v1811_v19  ;;  %v1533_v10 = vadd.f32 %v2311_v0, %v3533_v36  ;;  %v1527_v39 = vpop.f32.mrb[19].mxu1  ;;  %v1665_v0 = vcombine.high %v3577_v40, %v3577_v40 }
 0x2ae   :  { %v1826_v47 = vsub.f32 0.0, %v1810_v62  ;;  %v1528_v27 = vadd.f32 %v3533_v36, %v1527_v39  ;;  %v1694_v62 = vcombine.high %v3570_v46, %v3570_v46 }
 0x2af   :  { %v1844_v29 = vmul.f32 1.442695, %v1827_v42  ;;  %v3549_v49 = vmul.f32 %v1713_v20, %v1533_v10  ;;  %v1795_v42 = vmax.f32 %v3539_v63, 0.0  ;;  %v1794_v10 = vmax.f32 %v3541_v41, 0.0 }
 0x2b0   :  { %v1842_v24 = vmul.f32 1.442695, %v1826_v47  ;;  %v3551_v16 = vmul.f32 %v1709_v59, %v1528_v27  ;;  %v3597_v59 = vrot.slane %v3577_v40, %v2926_v12 }
 0x2b1   :  { %2598 = vpow2.f32 %v1844_v29  ;;  %v1813_v4 = vand.u32 2147483647, %v3549_v49 }
 0x2b2   :  { %2600 = vpow2.f32 %v1842_v24  ;;  %v1812_v55 = vand.u32 2147483647, %v3551_v16  ;;  %v1693_v24 = vrot.slane %v1665_v0, %v2926_v12 }
 0x2b3   :  { %v1829_v2 = vsub.f32 0.0, %v1813_v4 }
 0x2b4   :  { %v1828_v35 = vsub.f32 0.0, %v1812_v55  ;;  %v1753_v46 = vrot.slane %v1693_v24, %v2844_v3 }
 0x2b5   :  { %v1848_v18 = vmul.f32 1.442695, %v1829_v2 }
 0x2b6   :  { %v1846_v17 = vmul.f32 1.442695, %v1828_v35 }
 0x2b7   :  { %2602 = vpow2.f32 %v1848_v18 }
 0x2b8   :  { %2604 = vpow2.f32 %v1846_v17 }
 0x2bb   :  { %v2599_v43 = vpop.eup %2598 }
 0x2bc   :  { %v2601_v28 = vpop.eup %2600  ;;  %v1883_v22 = vadd.f32 1.0, %v2599_v43  ;;  %v1886_v23 = vmul.f32 -0.5, %v2599_v43  ;;  %v1889_v8 = vand.u32 2147483647, %v2599_v43 }
 0x2bd   :  { %v1874_v30 = vadd.f32 1.0, %v2601_v28  ;;  %v1877_v1 = vmul.f32 -0.5, %v2601_v28  ;;  %v1880_v61 = vand.u32 2147483647, %v2601_v28 }
 0x2be   :  { %2606 = vlog2.f32 %v1883_v22  ;;  %v1887_v15 = vadd.f32 1.0, %v1886_v23  ;;  %vm3608_vm2 = vcmp.lt.f32.partialorder %v1889_v8, 0.0004427343 }
 0x2bf   :  { %2608 = vlog2.f32 %v1874_v30  ;;  %v1878_v19 = vadd.f32 1.0, %v1877_v1  ;;  %vm3604_vm1 = vcmp.lt.f32.partialorder %v1880_v61, 0.0004427343  ;;  %v1797_v1 = vmax.f32 %v3549_v49, 0.0 }
 0x2c0   :  { %v1888_v50 = vmul.f32 %v2599_v43, %v1887_v15 }
 0x2c1   :  { %v3565_v6 = vpop.eup %2602  ;;  %v1879_v7 = vmul.f32 %v2601_v28, %v1878_v19 }
 0x2c2   :  { %v3572_v45 = vpop.eup %2604  ;;  %v1901_v5 = vadd.f32 1.0, %v3565_v6  ;;  %v1904_v47 = vmul.f32 -0.5, %v3565_v6  ;;  %v1907_v34 = vand.u32 2147483647, %v3565_v6 }
 0x2c3   :  { %v1892_v33 = vadd.f32 1.0, %v3572_v45  ;;  %v1895_v55 = vmul.f32 -0.5, %v3572_v45 }
 0x2c4   :  { %v2314_v51 = vpop.f32.mrb[20].mxu1  ;;  %2610 = vlog2.f32 %v1901_v5  ;;  %v1905_v21 = vadd.f32 1.0, %v1904_v47  ;;  %vm3632_vm3 = vcmp.lt.f32.partialorder %v1907_v34, 0.0004427343  ;;  %v1695_v34 = vcombine.high %v3597_v59, %v3597_v59 }
 0x2c5   :  { %v1543_v53 = vadd.f32 %v2314_v51, %v3533_v36  ;;  %v1537_v54 = vpop.f32.mrb[21].mxu1  ;;  %2612 = vlog2.f32 %v1892_v33  ;;  %v1896_v32 = vadd.f32 1.0, %v1895_v55 }
 0x2c6   :  { %v1538_v25 = vadd.f32 %v3533_v36, %v1537_v54  ;;  %v1906_v33 = vmul.f32 %v3565_v6, %v1905_v21 }
 0x2c7   :  { %v3589_v20 = vmul.f32 %v1721_v58, %v1543_v53  ;;  %v1898_v58 = vand.u32 2147483647, %v3572_v45  ;;  %v1897_v49 = vmul.f32 %v3572_v45, %v1896_v32 }
 0x2c8   :  { %v3601_v39 = vmul.f32 %v1717_v37, %v1538_v25  ;;  %v2607_v27 = vpop.eup %2606  ;;  %v2317_v29 = vpop.f32.mrb[22].mxu1 }
 0x2c9   :  { %v2609_v63 = vpop.eup %2608  ;;  %v1553_v2 = vadd.f32 %v2317_v29, %v3533_v36  ;;  %v1547_v35 = vpop.f32.mrb[23].mxu1  ;;  %v1885_v31 = vmul.f32 0.6931472, %v2607_v27  ;;  %v1815_v18 = vand.u32 2147483647, %v3589_v20  ;;  %v1745_v29 = vrot.slane %v1696_v14, %v2844_v3 }
 0x2ca   :  { %v1814_v41 = vand.u32 2147483647, %v3601_v39  ;;  %v1548_v17 = vadd.f32 %v3533_v36, %v1547_v35  ;;  %v1876_v44 = vmul.f32 0.6931472, %v2609_v63  ;;  %vm1899_vm4 = vcmp.lt.f32.partialorder %v1898_v58, 0.0004427343 }
 0x2cb   :  { %v3618_v57 = vmul.f32 %v1729_v38, %v1553_v2  ;;  %v1891_v11 = vsel %vm3608_vm2, %v1888_v50, %v1885_v31  ;;  %v1796_v38 = vmax.f32 %v3551_v16, 0.0  ;;  %v1831_v40 = vsub.f32 0.0, %v1815_v18 }
 0x2cc   :  { %v1830_v43 = vsub.f32 0.0, %v1814_v41  ;;  %v3622_v22 = vmul.f32 %v1725_v9, %v1548_v17  ;;  %v1882_v28 = vsel %vm3604_vm1, %v1879_v7, %v1876_v44  ;;  %v2019_v30 = vadd.f32 %v1891_v11, %v1795_v42 }
 0x2cd   :  { %v1817_v56 = vand.u32 2147483647, %v3618_v57  ;;  %v2018_v23 = vadd.f32 %v1882_v28, %v1794_v10  ;;  %v1852_v6 = vmul.f32 1.442695, %v1831_v40  ;;  %v1757_v40 = vrot.slane %v1695_v34, %v2844_v3 }
 0x2ce   :  { %v1850_v52 = vmul.f32 1.442695, %v1830_v43  ;;  %v2611_v37 = vpop.eup %2610  ;;  %v1816_v9 = vand.u32 2147483647, %v3622_v22 }
 0x2cf   :  { %v2613_v5 = vpop.eup %2612  ;;  %v2430_v51 = vpack.c.bf16 %v2019_v30, %v2018_v23  ;;  %v1903_v8 = vmul.f32 0.6931472, %v2611_v37  ;;  %v2320_v61 = vpop.f32.mrb[24].mxu1  ;;  %v1833_v25 = vsub.f32 0.0, %v1817_v56 }
 0x2d0   :  { %2614 = vpow2.f32 %v1850_v52  ;;  %v1832_v54 = vsub.f32 0.0, %v1816_v9  ;;  %v1894_v15 = vmul.f32 0.6931472, %v2613_v5  ;;  %v1563_v16 = vadd.f32 %v2320_v61, %v3533_v36  ;;  %v1557_v19 = vpop.f32.mrb[25].mxu1 }
 0x2d1   :  { %2431 = vmatpush3.bf16.xpose.msra.mxu0 %v2430_v51  ;;  %v1909_v42 = vsel %vm3632_vm3, %v1906_v33, %v1903_v8  ;;  %v1558_v10 = vadd.f32 %v3533_v36, %v1557_v19  ;;  %v1856_v41 = vmul.f32 1.442695, %v1833_v25  ;;  %2616 = vpow2.f32 %v1852_v6 }
 0x2d2   :  { %2432 = vmatprep.subr.bf16.mxu0 %v2739_v26  ;;  %v1900_v47 = vsel %vm1899_vm4, %v1897_v49, %v1894_v15  ;;  %v2021_v27 = vadd.f32 %v1909_v42, %v1797_v1  ;;  %v3645_v45 = vmul.f32 %v1737_v13, %v1563_v16  ;;  %v1854_v4 = vmul.f32 1.442695, %v1832_v54 }
 0x2d3   :  { %v2020_v50 = vadd.f32 %v1900_v47, %v1796_v38  ;;  %v3655_v55 = vmul.f32 %v1733_v60, %v1558_v10  ;;  %v2323_v63 = vpop.f32.mrb[26].mxu1  ;;  %v1741_v13 = vrot.slane %v1694_v62, %v2844_v3  ;;  %v1749_v60 = vrot.slane %v3597_v59, %v2844_v3 }
 0x2d4   :  { %v1819_v2 = vand.u32 2147483647, %v3645_v45  ;;  %v1573_v48 = vadd.f32 %v2323_v63, %v3533_v36  ;;  %v1567_v14 = vpop.f32.mrb[27].mxu1  ;;  %v1697_v62 = vcombine.high %v1693_v24, %v1693_v24  ;;  %2618 = vpow2.f32 %v1854_v4 }
 0x2d5   :  { %v2433_v12 = vpack.c.bf16 %v2021_v27, %v2020_v50  ;;  %v1818_v0 = vand.u32 2147483647, %v3655_v55  ;;  %v1568_v35 = vadd.f32 %v3533_v36, %v1567_v14  ;;  %2620 = vpow2.f32 %v1856_v41 }
 0x2d6   :  { %v1835_v7 = vsub.f32 0.0, %v1819_v2  ;;  %v3667_v31 = vmul.f32 %v1745_v29, %v1573_v48  ;;  %v1761_v59 = vrot.slane %v1697_v62, %v2844_v3  ;;  %v1799_v4 = vmax.f32 %v3589_v20, 0.0 }
 0x2d7   :  { %v1834_v18 = vsub.f32 0.0, %v1818_v0  ;;  %v3670_v17 = vmul.f32 %v1741_v13, %v1568_v35  ;;  %v2326_v44 = vpop.f32.mrb[28].mxu1  ;;  %v1798_v63 = vmax.f32 %v3601_v39, 0.0  ;;  %v1800_v39 = vmax.f32 %v3622_v22, 0.0 }
 0x2d8   :  { %v1860_v43 = vmul.f32 1.442695, %v1835_v7  ;;  %v1821_v11 = vand.u32 2147483647, %v3667_v31  ;;  %v1583_v21 = vadd.f32 %v2326_v44, %v3533_v36  ;;  %v1577_v28 = vpop.f32.mrb[29].mxu1  ;;  %v1803_v62 = vmax.f32 %v3645_v45, 0.0 }
 0x2d9   :  { %2434 = vmatpush3.bf16.xpose.msra.mxu0 %v2433_v12  ;;  %v1858_v32 = vmul.f32 1.442695, %v1834_v18  ;;  %v1820_v52 = vand.u32 2147483647, %v3670_v17  ;;  %v1578_v56 = vadd.f32 %v3533_v36, %v1577_v28  ;;  %v1802_v18 = vmax.f32 %v3655_v55, 0.0 }
 0x2da   :  { %v3676_v30 = vpop.eup %2614  ;;  %2435 = vmatprep.subr.bf16.mxu0 %v2739_v26  ;;  %v1837_v23 = vsub.f32 0.0, %v1821_v11  ;;  %v3681_v58 = vmul.f32 %v1753_v46, %v1583_v21  ;;  %v1801_v46 = vmax.f32 %v3618_v57, 0.0  ;;  %v1805_v44 = vmax.f32 %v3667_v31, 0.0 }
 0x2db   :  { %2622 = vpow2.f32 %v1858_v32  ;;  %v1836_v37 = vsub.f32 0.0, %v1820_v52  ;;  %v3684_v1 = vmul.f32 %v1749_v60, %v1578_v56  ;;  %v1910_v8 = vadd.f32 1.0, %v3676_v30  ;;  %v3694_v25 = vpop.eup %2616 }
 0x2dc   :  { %v2329_v38 = vpop.f32.mrb[30].mxu1  ;;  %2624 = vpow2.f32 %v1860_v43  ;;  %v1823_v9 = vand.u32 2147483647, %v3681_v58  ;;  %v1864_v33 = vmul.f32 1.442695, %v1837_v23  ;;  %v1913_v10 = vmul.f32 -0.5, %v3676_v30 }
 0x2dd   :  { %v1593_v5 = vadd.f32 %v2329_v38, %v3533_v36  ;;  %v1587_v51 = vpop.f32.mrb[31].mxu1  ;;  %v1862_v53 = vmul.f32 1.442695, %v1836_v37  ;;  %v1822_v54 = vand.u32 2147483647, %v3684_v1  ;;  %v1919_v50 = vadd.f32 1.0, %v3694_v25 }
 0x2de   :  { %v1588_v61 = vadd.f32 %v3533_v36, %v1587_v51  ;;  %v1839_v15 = vsub.f32 0.0, %v1823_v9  ;;  %v2619_v47 = vpop.eup %2618  ;;  %v1914_v2 = vadd.f32 1.0, %v1913_v10  ;;  %v1922_v0 = vmul.f32 -0.5, %v3694_v25 }
 0x2df   :  { %v3692_v49 = vmul.f32 %v1761_v59, %v1593_v5  ;;  %2626 = vpow2.f32 %v1862_v53  ;;  %v1838_v16 = vsub.f32 0.0, %v1822_v54  ;;  %v3701_v29 = vpop.eup %2620  ;;  %v1928_v48 = vadd.f32 1.0, %v2619_v47 }
 0x2e0   :  { %v3696_v19 = vmul.f32 %v1757_v40, %v1588_v61  ;;  %v1868_v42 = vmul.f32 1.442695, %v1839_v15  ;;  %2628 = vlog2.f32 %v1910_v8  ;;  %v1931_v35 = vmul.f32 -0.5, %v2619_v47 }
 0x2e1   :  { %v1825_v6 = vand.u32 2147483647, %v3692_v49  ;;  %2630 = vpow2.f32 %v1864_v33  ;;  %v1866_v27 = vmul.f32 1.442695, %v1838_v16  ;;  %v1937_v60 = vadd.f32 1.0, %v3701_v29 }
 0x2e2   :  { %v1824_v36 = vand.u32 2147483647, %v3696_v19  ;;  %2632 = vpow2.f32 %v1868_v42  ;;  %v1915_v43 = vmul.f32 %v3676_v30, %v1914_v2  ;;  %v1916_v11 = vand.u32 2147483647, %v3676_v30 }
 0x2e3   :  { %v1841_v24 = vsub.f32 0.0, %v1825_v6  ;;  %2634 = vpow2.f32 %v1866_v27  ;;  %v1925_v21 = vand.u32 2147483647, %v3694_v25  ;;  %v1923_v32 = vadd.f32 1.0, %v1922_v0 }
 0x2e4   :  { %v1840_v13 = vsub.f32 0.0, %v1824_v36  ;;  %2636 = vlog2.f32 %v1919_v50  ;;  %v1932_v52 = vadd.f32 1.0, %v1931_v35  ;;  %v1940_v56 = vmul.f32 -0.5, %v3701_v29 }
 0x2e5   :  { %v1872_v41 = vmul.f32 1.442695, %v1841_v24  ;;  %v3706_v14 = vpop.eup %2622  ;;  %v1934_v59 = vand.u32 2147483647, %v2619_v47  ;;  %v1943_v9 = vand.u32 2147483647, %v3701_v29  ;;  %v1924_v10 = vmul.f32 %v3694_v25, %v1923_v32 }
 0x2e6   :  { %v1870_v12 = vmul.f32 1.442695, %v1840_v13  ;;  %v3710_v7 = vpop.eup %2624  ;;  %v1946_v34 = vadd.f32 1.0, %v3706_v14  ;;  %v1949_v37 = vmul.f32 -0.5, %v3706_v14  ;;  %vm3733_vm5 = vcmp.lt.f32.partialorder %v1916_v11, 0.0004427343 }
 0x2e7   :  { %2638 = vpow2.f32 %v1872_v41  ;;  %v1955_v38 = vadd.f32 1.0, %v3710_v7  ;;  %v1958_v5 = vmul.f32 -0.5, %v3710_v7  ;;  %vm3737_vm6 = vcmp.lt.f32.partialorder %v1925_v21, 0.0004427343 }
 0x2e8   :  { %2640 = vpow2.f32 %v1870_v12  ;;  %v1941_v16 = vadd.f32 1.0, %v1940_v56  ;;  %v1952_v42 = vand.u32 2147483647, %v3706_v14  ;;  %v1933_v27 = vmul.f32 %v2619_v47, %v1932_v52 }
 0x2e9   :  { %2642 = vlog2.f32 %v1928_v48  ;;  %v3721_v28 = vpop.eup %2626  ;;  %vm3748_vm7 = vcmp.lt.f32.partialorder %v1934_v59, 0.0004427343  ;;  %v1950_v24 = vadd.f32 1.0, %v1949_v37  ;;  %vm3752_vm8 = vcmp.lt.f32.partialorder %v1943_v9, 0.0004427343 }
 0x2ea   :  { %2644 = vlog2.f32 %v1937_v60  ;;  %v2629_v23 = vpop.eup %2628  ;;  %v1964_v51 = vadd.f32 1.0, %v3721_v28  ;;  %v1967_v54 = vmul.f32 -0.5, %v3721_v28  ;;  %v1959_v41 = vadd.f32 1.0, %v1958_v5 }
 0x2eb   :  { %2646 = vlog2.f32 %v1946_v34  ;;  %v3726_v40 = vpop.eup %2630  ;;  %v1912_v30 = vmul.f32 0.6931472, %v2629_v23  ;;  %v1961_v0 = vand.u32 2147483647, %v3710_v7  ;;  %v1942_v34 = vmul.f32 %v3701_v29, %v1941_v16 }
 0x2ec   :  { %v3731_v8 = vpop.eup %2632  ;;  %2648 = vlog2.f32 %v1955_v38  ;;  %v1973_v2 = vadd.f32 1.0, %v3726_v40  ;;  %v1968_v25 = vadd.f32 1.0, %v1967_v54  ;;  %vm3766_vm9 = vcmp.lt.f32.partialorder %v1952_v42, 0.0004427343 }
 0x2ed   :  { %v3742_v61 = vpop.eup %2634  ;;  %v1918_v15 = vsel %vm3733_vm5, %v1915_v43, %v1912_v30  ;;  %2650 = vlog2.f32 %v1964_v51  ;;  %v1951_v21 = vmul.f32 %v3706_v14, %v1950_v24  ;;  %v1970_v32 = vand.u32 2147483647, %v3721_v28 }
 0x2ee   :  { %v2637_v6 = vpop.eup %2636  ;;  %v2022_v12 = vadd.f32 %v1918_v15, %v1798_v63  ;;  %v1982_v47 = vadd.f32 1.0, %v3742_v61  ;;  %2652 = vlog2.f32 %v1973_v2  ;;  %v1960_v23 = vmul.f32 %v3710_v7, %v1959_v41 }
 0x2ef   :  { %v1921_v50 = vmul.f32 0.6931472, %v2637_v6  ;;  %v1976_v29 = vmul.f32 -0.5, %v3726_v40  ;;  %v1991_v59 = vadd.f32 1.0, %v3731_v8  ;;  %vm3777_vm10 = vcmp.lt.f32.partialorder %v1961_v0, 0.0004427343 }
 0x2f0   :  { %2654 = vlog2.f32 %v1982_v47  ;;  %v1969_v20 = vmul.f32 %v3721_v28, %v1968_v25  ;;  %v1985_v5 = vmul.f32 -0.5, %v3742_v61  ;;  %v1979_v53 = vand.u32 2147483647, %v3726_v40 }
 0x2f1   :  { %v3757_v48 = vpop.eup %2638  ;;  %v1927_v60 = vsel %vm3737_vm6, %v1924_v10, %v1921_v50  ;;  %2656 = vlog2.f32 %v1991_v59  ;;  %v1977_v6 = vadd.f32 1.0, %v1976_v29  ;;  %vm3801_vm11 = vcmp.lt.f32.partialorder %v1970_v32, 0.0004427343 }
 0x2f2   :  { %v3761_v35 = vpop.eup %2640  ;;  %v2023_v63 = vadd.f32 %v1927_v60, %v1799_v4  ;;  %v1986_v57 = vadd.f32 1.0, %v1985_v5  ;;  %v2009_v50 = vadd.f32 1.0, %v3757_v48  ;;  %v1804_v41 = vmax.f32 %v3670_v17, 0.0 }
 0x2f3   :  { %v2643_v11 = vpop.eup %2642  ;;  %v2000_v54 = vadd.f32 1.0, %v3761_v35  ;;  %v1978_v2 = vmul.f32 %v3726_v40, %v1977_v6  ;;  %vm3813_vm12 = vcmp.lt.f32.partialorder %v1979_v53, 0.0004427343  ;;  %v2003_v0 = vmul.f32 -0.5, %v3761_v35 }
 0x2f4   :  { %v2645_v52 = vpop.eup %2644  ;;  %v1930_v56 = vmul.f32 0.6931472, %v2643_v11  ;;  %v2436_v38 = vpack.c.bf16 %v2023_v63, %v2022_v12  ;;  %v1987_v43 = vmul.f32 %v3742_v61, %v1986_v57  ;;  %v1997_v11 = vand.u32 2147483647, %v3731_v8 }
 0x2f5   :  { %v2647_v37 = vpop.eup %2646  ;;  %v1939_v30 = vmul.f32 0.6931472, %v2645_v52  ;;  %2658 = vlog2.f32 %v2000_v54  ;;  %v1806_v17 = vmax.f32 %v3684_v1, 0.0  ;;  %v2004_v52 = vadd.f32 1.0, %v2003_v0 }
 0x2f6   :  { %v1936_v4 = vsel %vm3748_vm7, %v1933_v27, %v1930_v56  ;;  %v1948_v14 = vmul.f32 0.6931472, %v2647_v37  ;;  %v2649_v7 = vpop.eup %2648  ;;  %2437 = vmatpush3.bf16.xpose.msra.mxu0 %v2436_v38  ;;  %2660 = vlog2.f32 %v2009_v50  ;;  %v2012_v56 = vmul.f32 -0.5, %v3757_v48 }
 0x2f7   :  { %v1945_v51 = vsel %vm3752_vm8, %v1942_v34, %v1939_v30  ;;  %v2024_v33 = vadd.f32 %v1936_v4, %v1800_v39  ;;  %v2651_v28 = vpop.eup %2650  ;;  %2438 = vmatprep.subr.bf16.mxu0 %v2739_v26  ;;  %v1957_v42 = vmul.f32 0.6931472, %v2649_v7  ;;  %v1994_v39 = vmul.f32 -0.5, %v3731_v8 }
 0x2f8   :  { %v2025_v15 = vadd.f32 %v1945_v51, %v1801_v46  ;;  %v1954_v16 = vsel %vm3766_vm9, %v1951_v21, %v1948_v14  ;;  %v1966_v22 = vmul.f32 0.6931472, %v2651_v28  ;;  %v2653_v13 = vpop.eup %2652  ;;  %v2006_v1 = vand.u32 2147483647, %v3761_v35 }
 0x2f9   :  { %v2026_v10 = vadd.f32 %v1954_v16, %v1802_v18  ;;  %v1963_v36 = vsel %vm3777_vm10, %v1960_v23, %v1957_v42  ;;  %v1988_v18 = vand.u32 2147483647, %v3742_v61  ;;  %v1975_v25 = vmul.f32 0.6931472, %v2653_v13 }
 0x2fa   :  { %v2439_v27 = vpack.c.bf16 %v2025_v15, %v2024_v33  ;;  %v2027_v46 = vadd.f32 %v1963_v36, %v1803_v62  ;;  %v1972_v55 = vsel %vm3801_vm11, %v1969_v20, %v1966_v22  ;;  %v2655_v45 = vpop.eup %2654  ;;  %v1995_v47 = vadd.f32 1.0, %v1994_v39 }
 0x2fb   :  { %v2028_v60 = vadd.f32 %v1972_v55, %v1804_v41  ;;  %v1984_v34 = vmul.f32 0.6931472, %v2655_v45  ;;  %v1981_v40 = vsel %vm3813_vm12, %v1978_v2, %v1975_v25  ;;  %vm1989_vm13 = vcmp.lt.f32.partialorder %v1988_v18, 0.0004427343  ;;  %v2657_v63 = vpop.eup %2656 }
 0x2fc   :  { %v2442_v62 = vpack.c.bf16 %v2027_v46, %v2026_v10  ;;  %v2029_v21 = vadd.f32 %v1981_v40, %v1805_v44  ;;  %v1993_v61 = vmul.f32 0.6931472, %v2657_v63  ;;  %v1996_v23 = vmul.f32 %v3731_v8, %v1995_v47 }
 0x2fd   :  { %v1990_v32 = vsel %vm1989_vm13, %v1987_v43, %v1984_v34  ;;  %v1807_v29 = vmax.f32 %v3681_v58, 0.0  ;;  %vm1998_vm14 = vcmp.lt.f32.partialorder %v1997_v11, 0.0004427343  ;;  %v2005_v31 = vmul.f32 %v3761_v35, %v2004_v52 }
 0x2fe   :  { %2440 = vmatpush3.bf16.xpose.msra.mxu0 %v2439_v27  ;;  %v2445_v59 = vpack.c.bf16 %v2029_v21, %v2028_v60  ;;  %v2030_v37 = vadd.f32 %v1990_v32, %v1806_v17  ;;  %v1999_v30 = vsel %vm1998_vm14, %v1996_v23, %v1993_v61  ;;  %v2013_v44 = vadd.f32 1.0, %v2012_v56 }
 0x2ff   :  { %2441 = vmatprep.subr.bf16.mxu0 %v2739_v26  ;;  %v2659_v38 = vpop.eup %2658  ;;  %v2031_v9 = vadd.f32 %v1999_v30, %v1807_v29  ;;  %vm2007_vm15 = vcmp.lt.f32.partialorder %v2006_v1, 0.0004427343  ;;  %v2015_v4 = vand.u32 2147483647, %v3757_v48  ;;  %v1808_v7 = vmax.f32 %v3696_v19, 0.0 }
 0x300   :  { %v2002_v20 = vmul.f32 0.6931472, %v2659_v38  ;;  %v2661_v8 = vpop.eup %2660  ;;  %v2014_v51 = vmul.f32 %v3757_v48, %v2013_v44  ;;  %v1809_v33 = vmax.f32 %v3692_v49, 0.0  ;;  %v2034_v19 = vld [vmem:[%s3865_s11] sm:$0x1]  ;;  %v2039_v48 = vpop.permute.xlu0 %2038 }
 0x301   :  { %v2448_v14 = vpack.c.bf16 %v2031_v9, %v2030_v37  ;;  %v2011_v58 = vmul.f32 0.6931472, %v2661_v8  ;;  %vm2016_vm0 = vcmp.lt.f32.partialorder %v2015_v4, 0.0004427343  ;;  %v2044_v49 = vrot.slane %v2039_v48, %v2844_v3 }
 0x302   :  { %v2008_v5 = vsel %vm2007_vm15, %v2005_v31, %v2002_v20 }
 0x303   :  { %v2032_v53 = vadd.f32 %v2008_v5, %v1808_v7  ;;  %v2017_v35 = vsel %vm2016_vm0, %v2014_v51, %v2011_v58 }
 0x304   :  { %v2033_v54 = vadd.f32 %v2017_v35, %v1809_v33 }
 0x306   :  { %2443 = vmatpush3.bf16.xpose.msra.mxu0 %v2442_v62  ;;  %v2451_v28 = vpack.c.bf16 %v2033_v54, %v2032_v53 }
 0x307   :  { %2444 = vmatprep.subr.bf16.mxu0 %v2739_v26 }
 0x30e   :  { %2446 = vmatpush3.bf16.xpose.msra.mxu0 %v2445_v59 }
 0x30f   :  { %2447 = vmatprep.subr.bf16.mxu0 %v2739_v26 }
 0x316   :  { %2449 = vmatpush3.bf16.xpose.msra.mxu0 %v2448_v14 }
 0x317   :  { %2450 = vmatprep.subr.bf16.mxu0 %v2739_v26 }
 0x31e   :  { %2452 = vmatpush3.bf16.xpose.msra.mxu0 %v2451_v28 }
 0x325   :  { %2363 = vmatmul.mubr.f32.vlgmr.msra.gmra.mrb[0].mxu0 %v2034_v19 }
 0x3f8   :  { %v2111_v15 = vpop.f32.mrb[0].mxu0 }
 0x3f9   :  { %v2112_v16 = vadd.f32 %v2111_v15, %v2044_v49  ;;  %v2364_v42 = vpop.f32.mrb[1].mxu0 }
 0x3fb   :  { %2115 = vst [vmem:[#allocation8] sm:$0x1] %v2112_v16 }
 0x3fc   :  { %2717 = shalt.err (!%p2714_p6)
}
 0x3fd   :  { %s2718_s0 = scalar_lea.hbm %s3867_s13, 16 }
 0x3fe   :  { %p2719_p7 = scmp.ne.s32.totalorder %s3867_s13, %s2718_s0  ;;  %p2722_p8 = scmp.lt.u32.totalorder %s2718_s0, %s3867_s13 }
 0x400   :  { %p2724_p9 = pnand %p2722_p8, %p2719_p7 }
 0x402   :  { %2727 = shalt.err (!%p2724_p9)
}
 0x403   :  { %2125 = dma.vmem_to_hbm [thread:$0]  %s2123_s19, 16, %s3867_s13, [#allocation5]  }
 0x404   :  { %2732 = dma.done.wait [#allocation5], 16  }
 0x405   :  { %2733 = vsyncadd [#allocation5], 4294967280 }
 0x406   :  { %2129 = vsyncpa [#allocation4], 1 }
 0x407   :  { %2130 = vsyncpa [#allocation7], 1 }
 0x408   :  { %2131 = vsyncpa [#allocation5], 1 }

</bundles_post_ra>
